<compile_context>
chip_gen: v5e
topology: v5e:2x2
jax: 0.10.0
libtpu: 0.0.40
codegen_flags: <defaults>
</compile_context>

<pallas_src>
import functools
import math

import jax
import jax.numpy as jnp
from jax import lax
from jax.experimental import pallas as pl
from jax.experimental.pallas import tpu as pltpu

# ----------------------------- configuration ------------------------------------
N_VOCAB = 512     # (49408 in the reference module)
N_EMBD = 128      # (768)
N_TOKENS = 8      # (77)
N_HEAD = 4        # (12)
N_LAYERS = 2      # (12)
BATCH = 2


# ----------------------------- helpers -------------------------------------------
def _layer_norm(v, g, b, eps=1e-5):
    mu = jnp.mean(v, axis=-1, keepdims=True)
    var = jnp.mean(jnp.square(v - mu), axis=-1, keepdims=True)
    return (v - mu) * lax.rsqrt(var + eps) * g + b


# ----------------------------- fused CLIP kernel ---------------------------------
def _clip_fused_kernel(n_head, ids_ref, pos_ref, tok_hbm,
                       ln1g, ln1b, wqkv, bqkv, wo, bo,
                       ln2g, ln2b, w1, b1, w2, b2,
                       lnfg, lnfb, out_ref, emb_buf, sems):
    bt = pl.program_id(0)                 # batch-tile (parallel)
    layer = pl.program_id(1)              # transformer layer (arbitrary)
    n_layers = pl.num_programs(1)

    M, E = out_ref.shape                  # M = batch_tile * T
    T = pos_ref.shape[0]
    n_b = M // T                          # batch elements in this tile
    d_head = E // n_head
    scale = 1.0 / math.sqrt(d_head)

    # ---- layer 0: fused embedding gather (token rows DMA'd from HBM) ----
    @pl.when(layer == 0)
    def _():
        copies = []
        for r in range(M):                              # static, unrolled
            b_local, t = divmod(r, T)
            tok_id = ids_ref[bt * n_b + b_local, t]     # SMEM scalar read
            cp = pltpu.make_async_copy(
                tok_hbm.at[pl.ds(tok_id, 1)],           # (1, E) row in HBM
                emb_buf.at[pl.ds(r, 1)],                # (1, E) slot in VMEM
                sems.at[r])
            cp.start()
            copies.append(cp)
        for cp in copies:
            cp.wait()
        for b_local in range(n_b):
            out_ref[pl.ds(b_local * T, T), :] = (
                emb_buf[pl.ds(b_local * T, T), :] + pos_ref[...])

    x = out_ref[...]                      # (M, E) f32 — resident activations

    # ---- attention block (pre-LN, causal self-attention, residual) ----
    h = _layer_norm(x, ln1g[0], ln1b[0])
    qkv = jnp.dot(h.astype(jnp.bfloat16), wqkv[0],
                  preferred_element_type=jnp.float32) + bqkv[0]
    q = qkv[:, 0 * E:1 * E] * scale       # fold 1/sqrt(d_head) into q
    k = qkv[:, 1 * E:2 * E]
    v = qkv[:, 2 * E:3 * E]

    # causal mask generated in-kernel — no (B*T)^2 bias streamed from HBM
    row = lax.broadcasted_iota(jnp.int32, (T, T), 0)
    col = lax.broadcasted_iota(jnp.int32, (T, T), 1)
    causal_bias = jnp.where(col <= row, 0.0, -1e30).astype(jnp.float32)

    wo_full = wo[0]                       # (E, E) bf16
    attn_rows = []
    for b_local in range(n_b):            # static loop: per batch element
        r0 = b_local * T
        acc_b = jnp.zeros((T, E), jnp.float32)
        for hh in range(n_head):          # static loop: per head (lane slices)
            lo = hh * d_head
            qh = q[r0:r0 + T, lo:lo + d_head]
            kh = k[r0:r0 + T, lo:lo + d_head]
            vh = v[r0:r0 + T, lo:lo + d_head]
            # scores = qh @ kh.T without materializing a transpose
            s = lax.dot_general(qh, kh, (((1,), (1,)), ((), ())),
                                preferred_element_type=jnp.float32)
            s = s + causal_bias
            m = jnp.max(s, axis=-1, keepdims=True)
            p = jnp.exp(s - m)
            attn = p * pl.reciprocal(jnp.sum(p, axis=-1, keepdims=True),
                                     approx=True)
            ctx = jnp.dot(attn, vh, preferred_element_type=jnp.float32)  # (T, dh)
            # fold context directly into the output projection (no concat)
            acc_b = acc_b + jnp.dot(ctx.astype(jnp.bfloat16),
                                    wo_full[lo:lo + d_head, :],
                                    preferred_element_type=jnp.float32)
        attn_rows.append(acc_b)
    attn_out = (attn_rows[0] if n_b == 1
                else jnp.concatenate(attn_rows, axis=0)) + bo[0]
    x = x + attn_out

    # ---- MLP block (pre-LN, QuickGELU, residual) ----
    h = _layer_norm(x, ln2g[0], ln2b[0])
    h1 = jnp.dot(h.astype(jnp.bfloat16), w1[0],
                 preferred_element_type=jnp.float32) + b1[0]
    # QuickGELU: x * sigmoid(1.702 x); reciprocal on the EUP slot
    h1 = h1 * pl.reciprocal(1.0 + jnp.exp(-1.702 * h1), approx=True)
    h2 = jnp.dot(h1.astype(jnp.bfloat16), w2[0],
                 preferred_element_type=jnp.float32) + b2[0]
    x = x + h2

    out_ref[...] = x                      # activations stay resident in VMEM

    @pl.when(layer == n_layers - 1)
    def _():
        out_ref[...] = _layer_norm(x, lnfg[...], lnfb[...])


def clip_forward_pallas(tokens, tok_emb, pos_emb, stacked, ln_f_g, ln_f_b,
                        n_head, batch_tile=1):
    B, T = tokens.shape
    V, E = tok_emb.shape
    L = stacked['w_qkv'].shape[0]
    assert B % batch_tile == 0
    n_bt = B // batch_tile
    m_tile = batch_tile * T

    def per_layer(arr):
        nd = arr.ndim
        return pl.BlockSpec((1,) + arr.shape[1:],
                            lambda bt, l, ids, _n=nd: (l,) + (0,) * (_n - 1))

    def replicated(arr):
        nd = arr.ndim
        return pl.BlockSpec(arr.shape, lambda bt, l, ids, _n=nd: (0,) * _n)

    weight_order = ['ln1_g', 'ln1_b', 'w_qkv', 'b_qkv', 'w_o', 'b_o',
                    'ln2_g', 'ln2_b', 'w_1', 'b_1', 'w_2', 'b_2']
    weights = [stacked[k] for k in weight_order]

    out = pl.pallas_call(
        functools.partial(_clip_fused_kernel, n_head),
        out_shape=jax.ShapeDtypeStruct((B * T, E), jnp.float32),
        grid_spec=pltpu.PrefetchScalarGridSpec(
            num_scalar_prefetch=1,                       # token ids -> SMEM
            grid=(n_bt, L),                              # (parallel, arbitrary)
            in_specs=[replicated(pos_emb),               # position embedding
                      pl.BlockSpec(memory_space=pl.ANY)] # embedding table (HBM)
                     + [per_layer(w) for w in weights]
                     + [replicated(ln_f_g), replicated(ln_f_b)],
            out_specs=pl.BlockSpec((m_tile, E), lambda bt, l, ids: (bt, 0)),
            scratch_shapes=[
                pltpu.VMEM((m_tile, E), jnp.float32),    # gathered embedding rows
                pltpu.SemaphoreType.DMA((m_tile,)),
            ],
        ),
        compiler_params=pltpu.CompilerParams(
            dimension_semantics=("parallel", "arbitrary"),
            vmem_limit_bytes=32 * 1024 * 1024),
    )(tokens.astype(jnp.int32), pos_emb, tok_emb, *weights, ln_f_g, ln_f_b)
    return out.reshape(B, T, E)


# ----------------------------- parameters ----------------------------------------
def init_clip_params(key):
    counter = [0]

    def rnd(shape, scale=0.02):
        counter[0] += 1
        return (scale * jax.random.normal(jax.random.fold_in(key, counter[0]),
                                          shape)).astype(jnp.float32)

    E = N_EMBD
    params = {
        'tok_emb': rnd((N_VOCAB, E)),
        'pos_emb': rnd((N_TOKENS, E)),   # nn.Parameter(zeros) in torch; random here
        'layers': [],
        'ln_f_g': (jnp.ones((1, E), jnp.float32) + rnd((1, E))),
        'ln_f_b': rnd((1, E)),
    }
    for _ in range(N_LAYERS):
        params['layers'].append({
            'ln1_g': jnp.ones((1, E), jnp.float32) + rnd((1, E)),
            'ln1_b': rnd((1, E)),
            'w_qkv': rnd((E, 3 * E)).astype(jnp.bfloat16),   # bf16 weight storage
            'b_qkv': rnd((1, 3 * E)),
            'w_o': rnd((E, E)).astype(jnp.bfloat16),
            'b_o': rnd((1, E)),
            'ln2_g': jnp.ones((1, E), jnp.float32) + rnd((1, E)),
            'ln2_b': rnd((1, E)),
            'w_1': rnd((E, 4 * E)).astype(jnp.bfloat16),
            'b_1': rnd((1, 4 * E)),
            'w_2': rnd((4 * E, E)).astype(jnp.bfloat16),
            'b_2': rnd((1, E)),
        })
    params['stacked'] = {k: jnp.stack([lp[k] for lp in params['layers']], axis=0)
                         for k in params['layers'][0]}
    return params


# ----------------------------- forward & reference -------------------------------
@jax.jit
def clip_forward(tokens, params):
    return clip_forward_pallas(tokens, params['tok_emb'], params['pos_emb'],
                               params['stacked'], params['ln_f_g'],
                               params['ln_f_b'], N_HEAD, batch_tile=1)


def clip_reference(tokens, params):
    """Pure-JAX reference matching the torch module semantics (f32 compute)."""
    def ln(v, g, b, eps=1e-5):
        mu = v.mean(-1, keepdims=True)
        var = ((v - mu) ** 2).mean(-1, keepdims=True)
        return (v - mu) / jnp.sqrt(var + eps) * g + b

    x = params['tok_emb'][tokens] + params['pos_emb'][None]
    B, T, E = x.shape
    dh = E // N_HEAD
    causal = jnp.triu(jnp.ones((T, T), bool), k=1)
    for lp in params['layers']:
        h = ln(x, lp['ln1_g'], lp['ln1_b'])
        qkv = h @ lp['w_qkv'] + lp['b_qkv']        # bf16 weights promote to f32
        q, k, v = jnp.split(qkv, 3, axis=-1)
        q = q.reshape(B, T, N_HEAD, dh).transpose(0, 2, 1, 3)
        k = k.reshape(B, T, N_HEAD, dh).transpose(0, 2, 1, 3)
        v = v.reshape(B, T, N_HEAD, dh).transpose(0, 2, 1, 3)
        s = jnp.einsum('bhtd,bhsd->bhts', q, k) / math.sqrt(dh)
        s = jnp.where(causal[None, None], -jnp.inf, s)
        a = jax.nn.softmax(s, axis=-1)
        ctx = jnp.einsum('bhts,bhsd->bhtd', a, v).transpose(0, 2, 1, 3).reshape(B, T, E)
        x = x + ctx @ lp['w_o'] + lp['b_o']
        h = ln(x, lp['ln2_g'], lp['ln2_b'])
        h = h @ lp['w_1'] + lp['b_1']
        h = h * jax.nn.sigmoid(1.702 * h)
        h = h @ lp['w_2'] + lp['b_2']
        x = x + h
    return ln(x, params['ln_f_g'], params['ln_f_b'])


# ----------------------------- main ----------------------------------------------
if __name__ == "__main__":
    key = jax.random.PRNGKey(0)
    params = init_clip_params(key)
    tokens = jax.random.randint(jax.random.fold_in(key, 12345),
                                (BATCH, N_TOKENS), 0, N_VOCAB, dtype=jnp.int32)

    out = jax.block_until_ready(clip_forward(tokens, params))

    assert out.shape == (BATCH, N_TOKENS, N_EMBD), out.shape
    assert out.dtype == jnp.float32
    assert bool(jnp.all(jnp.isfinite(out)))

    ref = jax.block_until_ready(clip_reference(tokens, params))
    max_err = float(jnp.max(jnp.abs(out - ref)))
    assert max_err < 5e-2, f"max abs err {max_err}"

    print("KERNEL_OK")
</pallas_src>

<mosaic_0001>
module attributes {stable_mosaic.version = 11 : i64} {
  func.func @_clip_fused_kernel(%arg0: i32, %arg1: i32, %arg2: memref<2x8xi32, #tpu.memory_space<smem>>, %arg3: memref<8x128xf32, #tpu.memory_space<vmem>>, %arg4: memref<512x128xf32, #tpu.memory_space<any>>, %arg5: memref<1x1x128xf32, #tpu.memory_space<vmem>>, %arg6: memref<1x1x128xf32, #tpu.memory_space<vmem>>, %arg7: memref<1x128x384xbf16, #tpu.memory_space<vmem>>, %arg8: memref<1x1x384xf32, #tpu.memory_space<vmem>>, %arg9: memref<1x128x128xbf16, #tpu.memory_space<vmem>>, %arg10: memref<1x1x128xf32, #tpu.memory_space<vmem>>, %arg11: memref<1x1x128xf32, #tpu.memory_space<vmem>>, %arg12: memref<1x1x128xf32, #tpu.memory_space<vmem>>, %arg13: memref<1x128x512xbf16, #tpu.memory_space<vmem>>, %arg14: memref<1x1x512xf32, #tpu.memory_space<vmem>>, %arg15: memref<1x512x128xbf16, #tpu.memory_space<vmem>>, %arg16: memref<1x1x128xf32, #tpu.memory_space<vmem>>, %arg17: memref<1x128xf32, #tpu.memory_space<vmem>>, %arg18: memref<1x128xf32, #tpu.memory_space<vmem>>, %arg19: memref<8x128xf32, #tpu.memory_space<vmem>>, %arg20: memref<8x128xf32, #tpu.memory_space<vmem>>, %arg21: memref<8x!tpu.dma_semaphore, #tpu.memory_space<semaphore_mem>>) attributes {dimension_semantics = [#tpu.dimension_semantics<parallel>, #tpu.dimension_semantics<arbitrary>], iteration_bounds = array<i64: 2, 2>, scalar_prefetch = 1 : i64, scratch_operands = 2 : i64, tpu.core_type = #tpu.core_type<tc>, window_params = [{pipeline_mode = #tpu.pipeline_mode<synchronous>, transform_indices = @transform_0, window_bounds = array<i64: 8, 128>}, {}, {transform_indices = @transform_2, window_bounds = array<i64: 1, 1, 128>}, {transform_indices = @transform_3, window_bounds = array<i64: 1, 1, 128>}, {transform_indices = @transform_4, window_bounds = array<i64: 1, 128, 384>}, {transform_indices = @transform_5, window_bounds = array<i64: 1, 1, 384>}, {transform_indices = @transform_6, window_bounds = array<i64: 1, 128, 128>}, {transform_indices = @transform_7, window_bounds = array<i64: 1, 1, 128>}, {transform_indices = @transform_8, window_bounds = array<i64: 1, 1, 128>}, {transform_indices = @transform_9, window_bounds = array<i64: 1, 1, 128>}, {transform_indices = @transform_10, window_bounds = array<i64: 1, 128, 512>}, {transform_indices = @transform_11, window_bounds = array<i64: 1, 1, 512>}, {transform_indices = @transform_12, window_bounds = array<i64: 1, 512, 128>}, {transform_indices = @transform_13, window_bounds = array<i64: 1, 1, 128>}, {pipeline_mode = #tpu.pipeline_mode<synchronous>, transform_indices = @transform_14, window_bounds = array<i64: 1, 128>}, {pipeline_mode = #tpu.pipeline_mode<synchronous>, transform_indices = @transform_15, window_bounds = array<i64: 1, 128>}, {transform_indices = @transform_16, window_bounds = array<i64: 8, 128>}]} {
    %c0_i32 = arith.constant 0 : i32
    %0 = arith.cmpi eq, %arg1, %c0_i32 : i32
    %1 = arith.extui %0 : i1 to i32
    %c0_i32_0 = arith.constant 0 : i32
    %2 = arith.cmpi ne, %1, %c0_i32_0 : i32
    scf.if %2 {
      %c1_i32_79 = arith.constant 1 : i32
      %191 = arith.muli %arg0, %c1_i32_79 : i32
      %c0_i32_80 = arith.constant 0 : i32
      %192 = arith.addi %191, %c0_i32_80 : i32
      %193 = arith.index_cast %192 : i32 to index
      %c0_81 = arith.constant 0 : index
      %194 = memref.load %arg2[%193, %c0_81] : memref<2x8xi32, #tpu.memory_space<smem>>
      %c0_i32_82 = arith.constant 0 : i32
      %c0_i32_83 = arith.constant 0 : i32
      %195 = tpu.memref_slice %arg4[%194, %c0_i32_83] : memref<512x128xf32, #tpu.memory_space<any>> -> memref<1x128xf32, #tpu.memory_space<any>>
      %c0_i32_84 = arith.constant 0 : i32
      %c0_i32_85 = arith.constant 0 : i32
      %196 = tpu.memref_slice %arg20[%c0_i32_84, %c0_i32_85] : memref<8x128xf32, #tpu.memory_space<vmem>> -> memref<1x128xf32, #tpu.memory_space<vmem>>
      %197 = tpu.memref_slice %arg21[%c0_i32_82] : memref<8x!tpu.dma_semaphore, #tpu.memory_space<semaphore_mem>> -> memref<1x!tpu.dma_semaphore, #tpu.memory_space<semaphore_mem>>
      %198 = tpu.memref_squeeze %197 : memref<1x!tpu.dma_semaphore, #tpu.memory_space<semaphore_mem>> -> memref<!tpu.dma_semaphore, #tpu.memory_space<semaphore_mem>>
      tpu.enqueue_dma source(%195 : memref<1x128xf32, #tpu.memory_space<any>>) target(%196 : memref<1x128xf32, #tpu.memory_space<vmem>>) target_semaphore(%198 : memref<!tpu.dma_semaphore, #tpu.memory_space<semaphore_mem>>)
      %c1_i32_86 = arith.constant 1 : i32
      %199 = arith.muli %arg0, %c1_i32_86 : i32
      %c0_i32_87 = arith.constant 0 : i32
      %200 = arith.addi %199, %c0_i32_87 : i32
      %201 = arith.index_cast %200 : i32 to index
      %c1 = arith.constant 1 : index
      %202 = memref.load %arg2[%201, %c1] : memref<2x8xi32, #tpu.memory_space<smem>>
      %c1_i32_88 = arith.constant 1 : i32
      %c0_i32_89 = arith.constant 0 : i32
      %203 = tpu.memref_slice %arg4[%202, %c0_i32_89] : memref<512x128xf32, #tpu.memory_space<any>> -> memref<1x128xf32, #tpu.memory_space<any>>
      %c1_i32_90 = arith.constant 1 : i32
      %c0_i32_91 = arith.constant 0 : i32
      %204 = tpu.memref_slice %arg20[%c1_i32_90, %c0_i32_91] : memref<8x128xf32, #tpu.memory_space<vmem>> -> memref<1x128xf32, #tpu.memory_space<vmem>>
      %205 = tpu.memref_slice %arg21[%c1_i32_88] : memref<8x!tpu.dma_semaphore, #tpu.memory_space<semaphore_mem>> -> memref<1x!tpu.dma_semaphore, #tpu.memory_space<semaphore_mem>>
      %206 = tpu.memref_squeeze %205 : memref<1x!tpu.dma_semaphore, #tpu.memory_space<semaphore_mem>> -> memref<!tpu.dma_semaphore, #tpu.memory_space<semaphore_mem>>
      tpu.enqueue_dma source(%203 : memref<1x128xf32, #tpu.memory_space<any>>) target(%204 : memref<1x128xf32, #tpu.memory_space<vmem>>) target_semaphore(%206 : memref<!tpu.dma_semaphore, #tpu.memory_space<semaphore_mem>>)
      %c1_i32_92 = arith.constant 1 : i32
      %207 = arith.muli %arg0, %c1_i32_92 : i32
      %c0_i32_93 = arith.constant 0 : i32
      %208 = arith.addi %207, %c0_i32_93 : i32
      %209 = arith.index_cast %208 : i32 to index
      %c2 = arith.constant 2 : index
      %210 = memref.load %arg2[%209, %c2] : memref<2x8xi32, #tpu.memory_space<smem>>
      %c2_i32 = arith.constant 2 : i32
      %c0_i32_94 = arith.constant 0 : i32
      %211 = tpu.memref_slice %arg4[%210, %c0_i32_94] : memref<512x128xf32, #tpu.memory_space<any>> -> memref<1x128xf32, #tpu.memory_space<any>>
      %c2_i32_95 = arith.constant 2 : i32
      %c0_i32_96 = arith.constant 0 : i32
      %212 = tpu.memref_slice %arg20[%c2_i32_95, %c0_i32_96] : memref<8x128xf32, #tpu.memory_space<vmem>> -> memref<1x128xf32, #tpu.memory_space<vmem>>
      %213 = tpu.memref_slice %arg21[%c2_i32] : memref<8x!tpu.dma_semaphore, #tpu.memory_space<semaphore_mem>> -> memref<1x!tpu.dma_semaphore, #tpu.memory_space<semaphore_mem>>
      %214 = tpu.memref_squeeze %213 : memref<1x!tpu.dma_semaphore, #tpu.memory_space<semaphore_mem>> -> memref<!tpu.dma_semaphore, #tpu.memory_space<semaphore_mem>>
      tpu.enqueue_dma source(%211 : memref<1x128xf32, #tpu.memory_space<any>>) target(%212 : memref<1x128xf32, #tpu.memory_space<vmem>>) target_semaphore(%214 : memref<!tpu.dma_semaphore, #tpu.memory_space<semaphore_mem>>)
      %c1_i32_97 = arith.constant 1 : i32
      %215 = arith.muli %arg0, %c1_i32_97 : i32
      %c0_i32_98 = arith.constant 0 : i32
      %216 = arith.addi %215, %c0_i32_98 : i32
      %217 = arith.index_cast %216 : i32 to index
      %c3 = arith.constant 3 : index
      %218 = memref.load %arg2[%217, %c3] : memref<2x8xi32, #tpu.memory_space<smem>>
      %c3_i32 = arith.constant 3 : i32
      %c0_i32_99 = arith.constant 0 : i32
      %219 = tpu.memref_slice %arg4[%218, %c0_i32_99] : memref<512x128xf32, #tpu.memory_space<any>> -> memref<1x128xf32, #tpu.memory_space<any>>
      %c3_i32_100 = arith.constant 3 : i32
      %c0_i32_101 = arith.constant 0 : i32
      %220 = tpu.memref_slice %arg20[%c3_i32_100, %c0_i32_101] : memref<8x128xf32, #tpu.memory_space<vmem>> -> memref<1x128xf32, #tpu.memory_space<vmem>>
      %221 = tpu.memref_slice %arg21[%c3_i32] : memref<8x!tpu.dma_semaphore, #tpu.memory_space<semaphore_mem>> -> memref<1x!tpu.dma_semaphore, #tpu.memory_space<semaphore_mem>>
      %222 = tpu.memref_squeeze %221 : memref<1x!tpu.dma_semaphore, #tpu.memory_space<semaphore_mem>> -> memref<!tpu.dma_semaphore, #tpu.memory_space<semaphore_mem>>
      tpu.enqueue_dma source(%219 : memref<1x128xf32, #tpu.memory_space<any>>) target(%220 : memref<1x128xf32, #tpu.memory_space<vmem>>) target_semaphore(%222 : memref<!tpu.dma_semaphore, #tpu.memory_space<semaphore_mem>>)
      %c1_i32_102 = arith.constant 1 : i32
      %223 = arith.muli %arg0, %c1_i32_102 : i32
      %c0_i32_103 = arith.constant 0 : i32
      %224 = arith.addi %223, %c0_i32_103 : i32
      %225 = arith.index_cast %224 : i32 to index
      %c4 = arith.constant 4 : index
      %226 = memref.load %arg2[%225, %c4] : memref<2x8xi32, #tpu.memory_space<smem>>
      %c4_i32 = arith.constant 4 : i32
      %c0_i32_104 = arith.constant 0 : i32
      %227 = tpu.memref_slice %arg4[%226, %c0_i32_104] : memref<512x128xf32, #tpu.memory_space<any>> -> memref<1x128xf32, #tpu.memory_space<any>>
      %c4_i32_105 = arith.constant 4 : i32
      %c0_i32_106 = arith.constant 0 : i32
      %228 = tpu.memref_slice %arg20[%c4_i32_105, %c0_i32_106] : memref<8x128xf32, #tpu.memory_space<vmem>> -> memref<1x128xf32, #tpu.memory_space<vmem>>
      %229 = tpu.memref_slice %arg21[%c4_i32] : memref<8x!tpu.dma_semaphore, #tpu.memory_space<semaphore_mem>> -> memref<1x!tpu.dma_semaphore, #tpu.memory_space<semaphore_mem>>
      %230 = tpu.memref_squeeze %229 : memref<1x!tpu.dma_semaphore, #tpu.memory_space<semaphore_mem>> -> memref<!tpu.dma_semaphore, #tpu.memory_space<semaphore_mem>>
      tpu.enqueue_dma source(%227 : memref<1x128xf32, #tpu.memory_space<any>>) target(%228 : memref<1x128xf32, #tpu.memory_space<vmem>>) target_semaphore(%230 : memref<!tpu.dma_semaphore, #tpu.memory_space<semaphore_mem>>)
      %c1_i32_107 = arith.constant 1 : i32
      %231 = arith.muli %arg0, %c1_i32_107 : i32
      %c0_i32_108 = arith.constant 0 : i32
      %232 = arith.addi %231, %c0_i32_108 : i32
      %233 = arith.index_cast %232 : i32 to index
      %c5 = arith.constant 5 : index
      %234 = memref.load %arg2[%233, %c5] : memref<2x8xi32, #tpu.memory_space<smem>>
      %c5_i32 = arith.constant 5 : i32
      %c0_i32_109 = arith.constant 0 : i32
      %235 = tpu.memref_slice %arg4[%234, %c0_i32_109] : memref<512x128xf32, #tpu.memory_space<any>> -> memref<1x128xf32, #tpu.memory_space<any>>
      %c5_i32_110 = arith.constant 5 : i32
      %c0_i32_111 = arith.constant 0 : i32
      %236 = tpu.memref_slice %arg20[%c5_i32_110, %c0_i32_111] : memref<8x128xf32, #tpu.memory_space<vmem>> -> memref<1x128xf32, #tpu.memory_space<vmem>>
      %237 = tpu.memref_slice %arg21[%c5_i32] : memref<8x!tpu.dma_semaphore, #tpu.memory_space<semaphore_mem>> -> memref<1x!tpu.dma_semaphore, #tpu.memory_space<semaphore_mem>>
      %238 = tpu.memref_squeeze %237 : memref<1x!tpu.dma_semaphore, #tpu.memory_space<semaphore_mem>> -> memref<!tpu.dma_semaphore, #tpu.memory_space<semaphore_mem>>
      tpu.enqueue_dma source(%235 : memref<1x128xf32, #tpu.memory_space<any>>) target(%236 : memref<1x128xf32, #tpu.memory_space<vmem>>) target_semaphore(%238 : memref<!tpu.dma_semaphore, #tpu.memory_space<semaphore_mem>>)
      %c1_i32_112 = arith.constant 1 : i32
      %239 = arith.muli %arg0, %c1_i32_112 : i32
      %c0_i32_113 = arith.constant 0 : i32
      %240 = arith.addi %239, %c0_i32_113 : i32
      %241 = arith.index_cast %240 : i32 to index
      %c6 = arith.constant 6 : index
      %242 = memref.load %arg2[%241, %c6] : memref<2x8xi32, #tpu.memory_space<smem>>
      %c6_i32 = arith.constant 6 : i32
      %c0_i32_114 = arith.constant 0 : i32
      %243 = tpu.memref_slice %arg4[%242, %c0_i32_114] : memref<512x128xf32, #tpu.memory_space<any>> -> memref<1x128xf32, #tpu.memory_space<any>>
      %c6_i32_115 = arith.constant 6 : i32
      %c0_i32_116 = arith.constant 0 : i32
      %244 = tpu.memref_slice %arg20[%c6_i32_115, %c0_i32_116] : memref<8x128xf32, #tpu.memory_space<vmem>> -> memref<1x128xf32, #tpu.memory_space<vmem>>
      %245 = tpu.memref_slice %arg21[%c6_i32] : memref<8x!tpu.dma_semaphore, #tpu.memory_space<semaphore_mem>> -> memref<1x!tpu.dma_semaphore, #tpu.memory_space<semaphore_mem>>
      %246 = tpu.memref_squeeze %245 : memref<1x!tpu.dma_semaphore, #tpu.memory_space<semaphore_mem>> -> memref<!tpu.dma_semaphore, #tpu.memory_space<semaphore_mem>>
      tpu.enqueue_dma source(%243 : memref<1x128xf32, #tpu.memory_space<any>>) target(%244 : memref<1x128xf32, #tpu.memory_space<vmem>>) target_semaphore(%246 : memref<!tpu.dma_semaphore, #tpu.memory_space<semaphore_mem>>)
      %c1_i32_117 = arith.constant 1 : i32
      %247 = arith.muli %arg0, %c1_i32_117 : i32
      %c0_i32_118 = arith.constant 0 : i32
      %248 = arith.addi %247, %c0_i32_118 : i32
      %249 = arith.index_cast %248 : i32 to index
      %c7 = arith.constant 7 : index
      %250 = memref.load %arg2[%249, %c7] : memref<2x8xi32, #tpu.memory_space<smem>>
      %c7_i32 = arith.constant 7 : i32
      %c0_i32_119 = arith.constant 0 : i32
      %251 = tpu.memref_slice %arg4[%250, %c0_i32_119] : memref<512x128xf32, #tpu.memory_space<any>> -> memref<1x128xf32, #tpu.memory_space<any>>
      %c7_i32_120 = arith.constant 7 : i32
      %c0_i32_121 = arith.constant 0 : i32
      %252 = tpu.memref_slice %arg20[%c7_i32_120, %c0_i32_121] : memref<8x128xf32, #tpu.memory_space<vmem>> -> memref<1x128xf32, #tpu.memory_space<vmem>>
      %253 = tpu.memref_slice %arg21[%c7_i32] : memref<8x!tpu.dma_semaphore, #tpu.memory_space<semaphore_mem>> -> memref<1x!tpu.dma_semaphore, #tpu.memory_space<semaphore_mem>>
      %254 = tpu.memref_squeeze %253 : memref<1x!tpu.dma_semaphore, #tpu.memory_space<semaphore_mem>> -> memref<!tpu.dma_semaphore, #tpu.memory_space<semaphore_mem>>
      tpu.enqueue_dma source(%251 : memref<1x128xf32, #tpu.memory_space<any>>) target(%252 : memref<1x128xf32, #tpu.memory_space<vmem>>) target_semaphore(%254 : memref<!tpu.dma_semaphore, #tpu.memory_space<semaphore_mem>>)
      %c0_i32_122 = arith.constant 0 : i32
      %c0_i32_123 = arith.constant 0 : i32
      %255 = tpu.memref_slice %arg4[%194, %c0_i32_123] : memref<512x128xf32, #tpu.memory_space<any>> -> memref<1x128xf32, #tpu.memory_space<any>>
      %c0_i32_124 = arith.constant 0 : i32
      %c0_i32_125 = arith.constant 0 : i32
      %256 = tpu.memref_slice %arg20[%c0_i32_124, %c0_i32_125] : memref<8x128xf32, #tpu.memory_space<vmem>> -> memref<1x128xf32, #tpu.memory_space<vmem>>
      %257 = tpu.memref_slice %arg21[%c0_i32_122] : memref<8x!tpu.dma_semaphore, #tpu.memory_space<semaphore_mem>> -> memref<1x!tpu.dma_semaphore, #tpu.memory_space<semaphore_mem>>
      %258 = tpu.memref_squeeze %257 : memref<1x!tpu.dma_semaphore, #tpu.memory_space<semaphore_mem>> -> memref<!tpu.dma_semaphore, #tpu.memory_space<semaphore_mem>>
      tpu.wait_dma2 semaphore(%258 : memref<!tpu.dma_semaphore, #tpu.memory_space<semaphore_mem>>) src(%255 : memref<1x128xf32, #tpu.memory_space<any>>) dst(%256 : memref<1x128xf32, #tpu.memory_space<vmem>>)
      %c1_i32_126 = arith.constant 1 : i32
      %c0_i32_127 = arith.constant 0 : i32
      %259 = tpu.memref_slice %arg4[%202, %c0_i32_127] : memref<512x128xf32, #tpu.memory_space<any>> -> memref<1x128xf32, #tpu.memory_space<any>>
      %c1_i32_128 = arith.constant 1 : i32
      %c0_i32_129 = arith.constant 0 : i32
      %260 = tpu.memref_slice %arg20[%c1_i32_128, %c0_i32_129] : memref<8x128xf32, #tpu.memory_space<vmem>> -> memref<1x128xf32, #tpu.memory_space<vmem>>
      %261 = tpu.memref_slice %arg21[%c1_i32_126] : memref<8x!tpu.dma_semaphore, #tpu.memory_space<semaphore_mem>> -> memref<1x!tpu.dma_semaphore, #tpu.memory_space<semaphore_mem>>
      %262 = tpu.memref_squeeze %261 : memref<1x!tpu.dma_semaphore, #tpu.memory_space<semaphore_mem>> -> memref<!tpu.dma_semaphore, #tpu.memory_space<semaphore_mem>>
      tpu.wait_dma2 semaphore(%262 : memref<!tpu.dma_semaphore, #tpu.memory_space<semaphore_mem>>) src(%259 : memref<1x128xf32, #tpu.memory_space<any>>) dst(%260 : memref<1x128xf32, #tpu.memory_space<vmem>>)
      %c2_i32_130 = arith.constant 2 : i32
      %c0_i32_131 = arith.constant 0 : i32
      %263 = tpu.memref_slice %arg4[%210, %c0_i32_131] : memref<512x128xf32, #tpu.memory_space<any>> -> memref<1x128xf32, #tpu.memory_space<any>>
      %c2_i32_132 = arith.constant 2 : i32
      %c0_i32_133 = arith.constant 0 : i32
      %264 = tpu.memref_slice %arg20[%c2_i32_132, %c0_i32_133] : memref<8x128xf32, #tpu.memory_space<vmem>> -> memref<1x128xf32, #tpu.memory_space<vmem>>
      %265 = tpu.memref_slice %arg21[%c2_i32_130] : memref<8x!tpu.dma_semaphore, #tpu.memory_space<semaphore_mem>> -> memref<1x!tpu.dma_semaphore, #tpu.memory_space<semaphore_mem>>
      %266 = tpu.memref_squeeze %265 : memref<1x!tpu.dma_semaphore, #tpu.memory_space<semaphore_mem>> -> memref<!tpu.dma_semaphore, #tpu.memory_space<semaphore_mem>>
      tpu.wait_dma2 semaphore(%266 : memref<!tpu.dma_semaphore, #tpu.memory_space<semaphore_mem>>) src(%263 : memref<1x128xf32, #tpu.memory_space<any>>) dst(%264 : memref<1x128xf32, #tpu.memory_space<vmem>>)
      %c3_i32_134 = arith.constant 3 : i32
      %c0_i32_135 = arith.constant 0 : i32
      %267 = tpu.memref_slice %arg4[%218, %c0_i32_135] : memref<512x128xf32, #tpu.memory_space<any>> -> memref<1x128xf32, #tpu.memory_space<any>>
      %c3_i32_136 = arith.constant 3 : i32
      %c0_i32_137 = arith.constant 0 : i32
      %268 = tpu.memref_slice %arg20[%c3_i32_136, %c0_i32_137] : memref<8x128xf32, #tpu.memory_space<vmem>> -> memref<1x128xf32, #tpu.memory_space<vmem>>
      %269 = tpu.memref_slice %arg21[%c3_i32_134] : memref<8x!tpu.dma_semaphore, #tpu.memory_space<semaphore_mem>> -> memref<1x!tpu.dma_semaphore, #tpu.memory_space<semaphore_mem>>
      %270 = tpu.memref_squeeze %269 : memref<1x!tpu.dma_semaphore, #tpu.memory_space<semaphore_mem>> -> memref<!tpu.dma_semaphore, #tpu.memory_space<semaphore_mem>>
      tpu.wait_dma2 semaphore(%270 : memref<!tpu.dma_semaphore, #tpu.memory_space<semaphore_mem>>) src(%267 : memref<1x128xf32, #tpu.memory_space<any>>) dst(%268 : memref<1x128xf32, #tpu.memory_space<vmem>>)
      %c4_i32_138 = arith.constant 4 : i32
      %c0_i32_139 = arith.constant 0 : i32
      %271 = tpu.memref_slice %arg4[%226, %c0_i32_139] : memref<512x128xf32, #tpu.memory_space<any>> -> memref<1x128xf32, #tpu.memory_space<any>>
      %c4_i32_140 = arith.constant 4 : i32
      %c0_i32_141 = arith.constant 0 : i32
      %272 = tpu.memref_slice %arg20[%c4_i32_140, %c0_i32_141] : memref<8x128xf32, #tpu.memory_space<vmem>> -> memref<1x128xf32, #tpu.memory_space<vmem>>
      %273 = tpu.memref_slice %arg21[%c4_i32_138] : memref<8x!tpu.dma_semaphore, #tpu.memory_space<semaphore_mem>> -> memref<1x!tpu.dma_semaphore, #tpu.memory_space<semaphore_mem>>
      %274 = tpu.memref_squeeze %273 : memref<1x!tpu.dma_semaphore, #tpu.memory_space<semaphore_mem>> -> memref<!tpu.dma_semaphore, #tpu.memory_space<semaphore_mem>>
      tpu.wait_dma2 semaphore(%274 : memref<!tpu.dma_semaphore, #tpu.memory_space<semaphore_mem>>) src(%271 : memref<1x128xf32, #tpu.memory_space<any>>) dst(%272 : memref<1x128xf32, #tpu.memory_space<vmem>>)
      %c5_i32_142 = arith.constant 5 : i32
      %c0_i32_143 = arith.constant 0 : i32
      %275 = tpu.memref_slice %arg4[%234, %c0_i32_143] : memref<512x128xf32, #tpu.memory_space<any>> -> memref<1x128xf32, #tpu.memory_space<any>>
      %c5_i32_144 = arith.constant 5 : i32
      %c0_i32_145 = arith.constant 0 : i32
      %276 = tpu.memref_slice %arg20[%c5_i32_144, %c0_i32_145] : memref<8x128xf32, #tpu.memory_space<vmem>> -> memref<1x128xf32, #tpu.memory_space<vmem>>
      %277 = tpu.memref_slice %arg21[%c5_i32_142] : memref<8x!tpu.dma_semaphore, #tpu.memory_space<semaphore_mem>> -> memref<1x!tpu.dma_semaphore, #tpu.memory_space<semaphore_mem>>
      %278 = tpu.memref_squeeze %277 : memref<1x!tpu.dma_semaphore, #tpu.memory_space<semaphore_mem>> -> memref<!tpu.dma_semaphore, #tpu.memory_space<semaphore_mem>>
      tpu.wait_dma2 semaphore(%278 : memref<!tpu.dma_semaphore, #tpu.memory_space<semaphore_mem>>) src(%275 : memref<1x128xf32, #tpu.memory_space<any>>) dst(%276 : memref<1x128xf32, #tpu.memory_space<vmem>>)
      %c6_i32_146 = arith.constant 6 : i32
      %c0_i32_147 = arith.constant 0 : i32
      %279 = tpu.memref_slice %arg4[%242, %c0_i32_147] : memref<512x128xf32, #tpu.memory_space<any>> -> memref<1x128xf32, #tpu.memory_space<any>>
      %c6_i32_148 = arith.constant 6 : i32
      %c0_i32_149 = arith.constant 0 : i32
      %280 = tpu.memref_slice %arg20[%c6_i32_148, %c0_i32_149] : memref<8x128xf32, #tpu.memory_space<vmem>> -> memref<1x128xf32, #tpu.memory_space<vmem>>
      %281 = tpu.memref_slice %arg21[%c6_i32_146] : memref<8x!tpu.dma_semaphore, #tpu.memory_space<semaphore_mem>> -> memref<1x!tpu.dma_semaphore, #tpu.memory_space<semaphore_mem>>
      %282 = tpu.memref_squeeze %281 : memref<1x!tpu.dma_semaphore, #tpu.memory_space<semaphore_mem>> -> memref<!tpu.dma_semaphore, #tpu.memory_space<semaphore_mem>>
      tpu.wait_dma2 semaphore(%282 : memref<!tpu.dma_semaphore, #tpu.memory_space<semaphore_mem>>) src(%279 : memref<1x128xf32, #tpu.memory_space<any>>) dst(%280 : memref<1x128xf32, #tpu.memory_space<vmem>>)
      %c7_i32_150 = arith.constant 7 : i32
      %c0_i32_151 = arith.constant 0 : i32
      %283 = tpu.memref_slice %arg4[%250, %c0_i32_151] : memref<512x128xf32, #tpu.memory_space<any>> -> memref<1x128xf32, #tpu.memory_space<any>>
      %c7_i32_152 = arith.constant 7 : i32
      %c0_i32_153 = arith.constant 0 : i32
      %284 = tpu.memref_slice %arg20[%c7_i32_152, %c0_i32_153] : memref<8x128xf32, #tpu.memory_space<vmem>> -> memref<1x128xf32, #tpu.memory_space<vmem>>
      %285 = tpu.memref_slice %arg21[%c7_i32_150] : memref<8x!tpu.dma_semaphore, #tpu.memory_space<semaphore_mem>> -> memref<1x!tpu.dma_semaphore, #tpu.memory_space<semaphore_mem>>
      %286 = tpu.memref_squeeze %285 : memref<1x!tpu.dma_semaphore, #tpu.memory_space<semaphore_mem>> -> memref<!tpu.dma_semaphore, #tpu.memory_space<semaphore_mem>>
      tpu.wait_dma2 semaphore(%286 : memref<!tpu.dma_semaphore, #tpu.memory_space<semaphore_mem>>) src(%283 : memref<1x128xf32, #tpu.memory_space<any>>) dst(%284 : memref<1x128xf32, #tpu.memory_space<vmem>>)
      %c0_154 = arith.constant 0 : index
      %c0_155 = arith.constant 0 : index
      %287 = vector.load %arg20[%c0_154, %c0_155] : memref<8x128xf32, #tpu.memory_space<vmem>>, vector<8x128xf32>
      %c0_156 = arith.constant 0 : index
      %c0_157 = arith.constant 0 : index
      %288 = vector.load %arg3[%c0_156, %c0_157] : memref<8x128xf32, #tpu.memory_space<vmem>>, vector<8x128xf32>
      %289 = arith.addf %287, %288 : vector<8x128xf32>
      %c0_158 = arith.constant 0 : index
      %c0_159 = arith.constant 0 : index
      %290 = vector.load %arg19[%c0_158, %c0_159] : memref<8x128xf32, #tpu.memory_space<vmem>>, vector<8x128xf32>
      tpu.vector_store %arg19[%c0_158, %c0_159], %289 {strides = array<i32>} : memref<8x128xf32, #tpu.memory_space<vmem>>, vector<8x128xf32>,
    } else {
    }
    %c0 = arith.constant 0 : index
    %c0_1 = arith.constant 0 : index
    %3 = vector.load %arg19[%c0, %c0_1] : memref<8x128xf32, #tpu.memory_space<vmem>>, vector<8x128xf32>
    %c0_2 = arith.constant 0 : index
    %c0_3 = arith.constant 0 : index
    %c0_4 = arith.constant 0 : index
    %4 = vector.load %arg5[%c0_2, %c0_3, %c0_4] : memref<1x1x128xf32, #tpu.memory_space<vmem>>, vector<1x1x128xf32>
    %5 = vector.shape_cast %4 : vector<1x1x128xf32> to vector<1x128xf32>
    %c0_5 = arith.constant 0 : index
    %c0_6 = arith.constant 0 : index
    %c0_7 = arith.constant 0 : index
    %6 = vector.load %arg6[%c0_5, %c0_6, %c0_7] : memref<1x1x128xf32, #tpu.memory_space<vmem>>, vector<1x1x128xf32>
    %7 = vector.shape_cast %6 : vector<1x1x128xf32> to vector<1x128xf32>
    %cst = arith.constant dense<0.000000e+00> : vector<8xf32>
    %8 = vector.multi_reduction <add>, %3, %cst [1] : vector<8x128xf32> to vector<8xf32>
    %9 = vector.shape_cast %8 : vector<8xf32> to vector<8x1xf32>
    %cst_8 = arith.constant 1.280000e+02 : f32
    %10 = vector.broadcast %cst_8 : f32 to vector<8x1xf32>
    %11 = arith.divf %9, %10 : vector<8x1xf32>
    %12 = vector.broadcast %11 : vector<8x1xf32> to vector<8x128xf32>
    %13 = arith.subf %3, %12 : vector<8x128xf32>
    %14 = arith.mulf %13, %13 : vector<8x128xf32>
    %cst_9 = arith.constant dense<0.000000e+00> : vector<8xf32>
    %15 = vector.multi_reduction <add>, %14, %cst_9 [1] : vector<8x128xf32> to vector<8xf32>
    %16 = vector.shape_cast %15 : vector<8xf32> to vector<8x1xf32>
    %cst_10 = arith.constant 1.280000e+02 : f32
    %17 = vector.broadcast %cst_10 : f32 to vector<8x1xf32>
    %18 = arith.divf %16, %17 : vector<8x1xf32>
    %19 = vector.broadcast %11 : vector<8x1xf32> to vector<8x128xf32>
    %20 = arith.subf %3, %19 : vector<8x128xf32>
    %cst_11 = arith.constant 9.99999974E-6 : f32
    %21 = vector.broadcast %cst_11 : f32 to vector<8x1xf32>
    %22 = arith.addf %18, %21 : vector<8x1xf32>
    %23 = math.rsqrt %22 : vector<8x1xf32>
    %24 = vector.broadcast %23 : vector<8x1xf32> to vector<8x128xf32>
    %25 = arith.mulf %20, %24 : vector<8x128xf32>
    %26 = vector.broadcast %5 : vector<1x128xf32> to vector<8x128xf32>
    %27 = arith.mulf %25, %26 : vector<8x128xf32>
    %28 = vector.broadcast %7 : vector<1x128xf32> to vector<8x128xf32>
    %29 = arith.addf %27, %28 : vector<8x128xf32>
    %30 = arith.truncf %29 : vector<8x128xf32> to vector<8x128xbf16>
    %c0_12 = arith.constant 0 : index
    %c0_13 = arith.constant 0 : index
    %c0_14 = arith.constant 0 : index
    %31 = vector.load %arg7[%c0_12, %c0_13, %c0_14] : memref<1x128x384xbf16, #tpu.memory_space<vmem>>, vector<1x128x384xbf16>
    %32 = vector.shape_cast %31 : vector<1x128x384xbf16> to vector<128x384xbf16>
    %cst_15 = arith.constant dense<0.000000e+00> : vector<8x384xf32>
    %33 = tpu.matmul %30, %32, %cst_15 {dimension_numbers = #tpu.dot_dimension_numbers<[1], [0], [0], [1], [0, 0, 1, 1], [], []>} : vector<8x128xbf16>, vector<128x384xbf16>, vector<8x384xf32> -> vector<8x384xf32>
    %c0_16 = arith.constant 0 : index
    %c0_17 = arith.constant 0 : index
    %c0_18 = arith.constant 0 : index
    %34 = vector.load %arg8[%c0_16, %c0_17, %c0_18] : memref<1x1x384xf32, #tpu.memory_space<vmem>>, vector<1x1x384xf32>
    %35 = vector.shape_cast %34 : vector<1x1x384xf32> to vector<1x384xf32>
    %36 = vector.broadcast %35 : vector<1x384xf32> to vector<8x384xf32>
    %37 = arith.addf %33, %36 : vector<8x384xf32>
    %38 = vector.extract_strided_slice %37 {offsets = [0, 0], sizes = [8, 128], strides = [1, 1]} : vector<8x384xf32> to vector<8x128xf32>
    %cst_19 = arith.constant 0.176776692 : f32
    %39 = vector.broadcast %cst_19 : f32 to vector<8x128xf32>
    %40 = arith.mulf %38, %39 : vector<8x128xf32>
    %41 = vector.extract_strided_slice %37 {offsets = [0, 128], sizes = [8, 128], strides = [1, 1]} : vector<8x384xf32> to vector<8x128xf32>
    %42 = vector.extract_strided_slice %37 {offsets = [0, 256], sizes = [8, 128], strides = [1, 1]} : vector<8x384xf32> to vector<8x128xf32>
    %43 = tpu.iota {dimensions = array<i32: 0>} : vector<8x8xi32>
    %44 = tpu.iota {dimensions = array<i32: 1>} : vector<8x8xi32>
    %45 = arith.cmpi sle, %44, %43 : vector<8x8xi32>
    %cst_20 = arith.constant 0.000000e+00 : f32
    %cst_21 = arith.constant -1.000000e+30 : f32
    %46 = vector.broadcast %cst_20 : f32 to vector<8x8xf32>
    %47 = vector.broadcast %cst_21 : f32 to vector<8x8xf32>
    %48 = arith.select %45, %46, %47 : vector<8x8xi1>, vector<8x8xf32>
    %c0_22 = arith.constant 0 : index
    %c0_23 = arith.constant 0 : index
    %c0_24 = arith.constant 0 : index
    %49 = vector.load %arg9[%c0_22, %c0_23, %c0_24] : memref<1x128x128xbf16, #tpu.memory_space<vmem>>, vector<1x128x128xbf16>
    %50 = vector.shape_cast %49 : vector<1x128x128xbf16> to vector<128x128xbf16>
    %cst_25 = arith.constant 0.000000e+00 : f32
    %51 = vector.broadcast %cst_25 : f32 to vector<8x128xf32>
    %52 = vector.extract_strided_slice %40 {offsets = [0, 0], sizes = [8, 32], strides = [1, 1]} : vector<8x128xf32> to vector<8x32xf32>
    %53 = vector.extract_strided_slice %41 {offsets = [0, 0], sizes = [8, 32], strides = [1, 1]} : vector<8x128xf32> to vector<8x32xf32>
    %54 = vector.extract_strided_slice %42 {offsets = [0, 0], sizes = [8, 32], strides = [1, 1]} : vector<8x128xf32> to vector<8x32xf32>
    %cst_26 = arith.constant dense<0.000000e+00> : vector<8x8xf32>
    %55 = tpu.matmul %52, %53, %cst_26 {dimension_numbers = #tpu.dot_dimension_numbers<[1], [1], [0], [0], [0, 0, 1, 0], [], []>} : vector<8x32xf32>, vector<8x32xf32>, vector<8x8xf32> -> vector<8x8xf32>
    %56 = arith.addf %55, %48 : vector<8x8xf32>
    %cst_27 = arith.constant dense<0xFF800000> : vector<8xf32>
    %57 = vector.multi_reduction <maximumf>, %56, %cst_27 [1] : vector<8x8xf32> to vector<8xf32>
    %58 = vector.shape_cast %57 : vector<8xf32> to vector<8x1xf32>
    %59 = vector.broadcast %58 : vector<8x1xf32> to vector<8x8xf32>
    %60 = arith.subf %56, %59 : vector<8x8xf32>
    %61 = math.exp %60 : vector<8x8xf32>
    %cst_28 = arith.constant dense<0.000000e+00> : vector<8xf32>
    %62 = vector.multi_reduction <add>, %61, %cst_28 [1] : vector<8x8xf32> to vector<8xf32>
    %63 = vector.shape_cast %62 : vector<8xf32> to vector<8x1xf32>
    %64 = tpu.reciprocal %63 {approx = true} : vector<8x1xf32> -> vector<8x1xf32>
    %65 = vector.broadcast %64 : vector<8x1xf32> to vector<8x8xf32>
    %66 = arith.mulf %61, %65 : vector<8x8xf32>
    %cst_29 = arith.constant dense<0.000000e+00> : vector<8x32xf32>
    %67 = tpu.matmul %66, %54, %cst_29 {dimension_numbers = #tpu.dot_dimension_numbers<[1], [0], [0], [1], [0, 0, 1, 1], [], []>} : vector<8x8xf32>, vector<8x32xf32>, vector<8x32xf32> -> vector<8x32xf32>
    %68 = arith.truncf %67 : vector<8x32xf32> to vector<8x32xbf16>
    %69 = vector.extract_strided_slice %50 {offsets = [0, 0], sizes = [32, 128], strides = [1, 1]} : vector<128x128xbf16> to vector<32x128xbf16>
    %cst_30 = arith.constant dense<0.000000e+00> : vector<8x128xf32>
    %70 = tpu.matmul %68, %69, %cst_30 {dimension_numbers = #tpu.dot_dimension_numbers<[1], [0], [0], [1], [0, 0, 1, 1], [], []>} : vector<8x32xbf16>, vector<32x128xbf16>, vector<8x128xf32> -> vector<8x128xf32>
    %71 = arith.addf %51, %70 : vector<8x128xf32>
    %72 = vector.extract_strided_slice %40 {offsets = [0, 32], sizes = [8, 32], strides = [1, 1]} : vector<8x128xf32> to vector<8x32xf32>
    %73 = vector.extract_strided_slice %41 {offsets = [0, 32], sizes = [8, 32], strides = [1, 1]} : vector<8x128xf32> to vector<8x32xf32>
    %74 = vector.extract_strided_slice %42 {offsets = [0, 32], sizes = [8, 32], strides = [1, 1]} : vector<8x128xf32> to vector<8x32xf32>
    %cst_31 = arith.constant dense<0.000000e+00> : vector<8x8xf32>
    %75 = tpu.matmul %72, %73, %cst_31 {dimension_numbers = #tpu.dot_dimension_numbers<[1], [1], [0], [0], [0, 0, 1, 0], [], []>} : vector<8x32xf32>, vector<8x32xf32>, vector<8x8xf32> -> vector<8x8xf32>
    %76 = arith.addf %75, %48 : vector<8x8xf32>
    %cst_32 = arith.constant dense<0xFF800000> : vector<8xf32>
    %77 = vector.multi_reduction <maximumf>, %76, %cst_32 [1] : vector<8x8xf32> to vector<8xf32>
    %78 = vector.shape_cast %77 : vector<8xf32> to vector<8x1xf32>
    %79 = vector.broadcast %78 : vector<8x1xf32> to vector<8x8xf32>
    %80 = arith.subf %76, %79 : vector<8x8xf32>
    %81 = math.exp %80 : vector<8x8xf32>
    %cst_33 = arith.constant dense<0.000000e+00> : vector<8xf32>
    %82 = vector.multi_reduction <add>, %81, %cst_33 [1] : vector<8x8xf32> to vector<8xf32>
    %83 = vector.shape_cast %82 : vector<8xf32> to vector<8x1xf32>
    %84 = tpu.reciprocal %83 {approx = true} : vector<8x1xf32> -> vector<8x1xf32>
    %85 = vector.broadcast %84 : vector<8x1xf32> to vector<8x8xf32>
    %86 = arith.mulf %81, %85 : vector<8x8xf32>
    %cst_34 = arith.constant dense<0.000000e+00> : vector<8x32xf32>
    %87 = tpu.matmul %86, %74, %cst_34 {dimension_numbers = #tpu.dot_dimension_numbers<[1], [0], [0], [1], [0, 0, 1, 1], [], []>} : vector<8x8xf32>, vector<8x32xf32>, vector<8x32xf32> -> vector<8x32xf32>
    %88 = arith.truncf %87 : vector<8x32xf32> to vector<8x32xbf16>
    %89 = vector.extract_strided_slice %50 {offsets = [32, 0], sizes = [32, 128], strides = [1, 1]} : vector<128x128xbf16> to vector<32x128xbf16>
    %cst_35 = arith.constant dense<0.000000e+00> : vector<8x128xf32>
    %90 = tpu.matmul %88, %89, %cst_35 {dimension_numbers = #tpu.dot_dimension_numbers<[1], [0], [0], [1], [0, 0, 1, 1], [], []>} : vector<8x32xbf16>, vector<32x128xbf16>, vector<8x128xf32> -> vector<8x128xf32>
    %91 = arith.addf %71, %90 : vector<8x128xf32>
    %92 = vector.extract_strided_slice %40 {offsets = [0, 64], sizes = [8, 32], strides = [1, 1]} : vector<8x128xf32> to vector<8x32xf32>
    %93 = vector.extract_strided_slice %41 {offsets = [0, 64], sizes = [8, 32], strides = [1, 1]} : vector<8x128xf32> to vector<8x32xf32>
    %94 = vector.extract_strided_slice %42 {offsets = [0, 64], sizes = [8, 32], strides = [1, 1]} : vector<8x128xf32> to vector<8x32xf32>
    %cst_36 = arith.constant dense<0.000000e+00> : vector<8x8xf32>
    %95 = tpu.matmul %92, %93, %cst_36 {dimension_numbers = #tpu.dot_dimension_numbers<[1], [1], [0], [0], [0, 0, 1, 0], [], []>} : vector<8x32xf32>, vector<8x32xf32>, vector<8x8xf32> -> vector<8x8xf32>
    %96 = arith.addf %95, %48 : vector<8x8xf32>
    %cst_37 = arith.constant dense<0xFF800000> : vector<8xf32>
    %97 = vector.multi_reduction <maximumf>, %96, %cst_37 [1] : vector<8x8xf32> to vector<8xf32>
    %98 = vector.shape_cast %97 : vector<8xf32> to vector<8x1xf32>
    %99 = vector.broadcast %98 : vector<8x1xf32> to vector<8x8xf32>
    %100 = arith.subf %96, %99 : vector<8x8xf32>
    %101 = math.exp %100 : vector<8x8xf32>
    %cst_38 = arith.constant dense<0.000000e+00> : vector<8xf32>
    %102 = vector.multi_reduction <add>, %101, %cst_38 [1] : vector<8x8xf32> to vector<8xf32>
    %103 = vector.shape_cast %102 : vector<8xf32> to vector<8x1xf32>
    %104 = tpu.reciprocal %103 {approx = true} : vector<8x1xf32> -> vector<8x1xf32>
    %105 = vector.broadcast %104 : vector<8x1xf32> to vector<8x8xf32>
    %106 = arith.mulf %101, %105 : vector<8x8xf32>
    %cst_39 = arith.constant dense<0.000000e+00> : vector<8x32xf32>
    %107 = tpu.matmul %106, %94, %cst_39 {dimension_numbers = #tpu.dot_dimension_numbers<[1], [0], [0], [1], [0, 0, 1, 1], [], []>} : vector<8x8xf32>, vector<8x32xf32>, vector<8x32xf32> -> vector<8x32xf32>
    %108 = arith.truncf %107 : vector<8x32xf32> to vector<8x32xbf16>
    %109 = vector.extract_strided_slice %50 {offsets = [64, 0], sizes = [32, 128], strides = [1, 1]} : vector<128x128xbf16> to vector<32x128xbf16>
    %cst_40 = arith.constant dense<0.000000e+00> : vector<8x128xf32>
    %110 = tpu.matmul %108, %109, %cst_40 {dimension_numbers = #tpu.dot_dimension_numbers<[1], [0], [0], [1], [0, 0, 1, 1], [], []>} : vector<8x32xbf16>, vector<32x128xbf16>, vector<8x128xf32> -> vector<8x128xf32>
    %111 = arith.addf %91, %110 : vector<8x128xf32>
    %112 = vector.extract_strided_slice %40 {offsets = [0, 96], sizes = [8, 32], strides = [1, 1]} : vector<8x128xf32> to vector<8x32xf32>
    %113 = vector.extract_strided_slice %41 {offsets = [0, 96], sizes = [8, 32], strides = [1, 1]} : vector<8x128xf32> to vector<8x32xf32>
    %114 = vector.extract_strided_slice %42 {offsets = [0, 96], sizes = [8, 32], strides = [1, 1]} : vector<8x128xf32> to vector<8x32xf32>
    %cst_41 = arith.constant dense<0.000000e+00> : vector<8x8xf32>
    %115 = tpu.matmul %112, %113, %cst_41 {dimension_numbers = #tpu.dot_dimension_numbers<[1], [1], [0], [0], [0, 0, 1, 0], [], []>} : vector<8x32xf32>, vector<8x32xf32>, vector<8x8xf32> -> vector<8x8xf32>
    %116 = arith.addf %115, %48 : vector<8x8xf32>
    %cst_42 = arith.constant dense<0xFF800000> : vector<8xf32>
    %117 = vector.multi_reduction <maximumf>, %116, %cst_42 [1] : vector<8x8xf32> to vector<8xf32>
    %118 = vector.shape_cast %117 : vector<8xf32> to vector<8x1xf32>
    %119 = vector.broadcast %118 : vector<8x1xf32> to vector<8x8xf32>
    %120 = arith.subf %116, %119 : vector<8x8xf32>
    %121 = math.exp %120 : vector<8x8xf32>
    %cst_43 = arith.constant dense<0.000000e+00> : vector<8xf32>
    %122 = vector.multi_reduction <add>, %121, %cst_43 [1] : vector<8x8xf32> to vector<8xf32>
    %123 = vector.shape_cast %122 : vector<8xf32> to vector<8x1xf32>
    %124 = tpu.reciprocal %123 {approx = true} : vector<8x1xf32> -> vector<8x1xf32>
    %125 = vector.broadcast %124 : vector<8x1xf32> to vector<8x8xf32>
    %126 = arith.mulf %121, %125 : vector<8x8xf32>
    %cst_44 = arith.constant dense<0.000000e+00> : vector<8x32xf32>
    %127 = tpu.matmul %126, %114, %cst_44 {dimension_numbers = #tpu.dot_dimension_numbers<[1], [0], [0], [1], [0, 0, 1, 1], [], []>} : vector<8x8xf32>, vector<8x32xf32>, vector<8x32xf32> -> vector<8x32xf32>
    %128 = arith.truncf %127 : vector<8x32xf32> to vector<8x32xbf16>
    %129 = vector.extract_strided_slice %50 {offsets = [96, 0], sizes = [32, 128], strides = [1, 1]} : vector<128x128xbf16> to vector<32x128xbf16>
    %cst_45 = arith.constant dense<0.000000e+00> : vector<8x128xf32>
    %130 = tpu.matmul %128, %129, %cst_45 {dimension_numbers = #tpu.dot_dimension_numbers<[1], [0], [0], [1], [0, 0, 1, 1], [], []>} : vector<8x32xbf16>, vector<32x128xbf16>, vector<8x128xf32> -> vector<8x128xf32>
    %131 = arith.addf %111, %130 : vector<8x128xf32>
    %c0_46 = arith.constant 0 : index
    %c0_47 = arith.constant 0 : index
    %c0_48 = arith.constant 0 : index
    %132 = vector.load %arg10[%c0_46, %c0_47, %c0_48] : memref<1x1x128xf32, #tpu.memory_space<vmem>>, vector<1x1x128xf32>
    %133 = vector.shape_cast %132 : vector<1x1x128xf32> to vector<1x128xf32>
    %134 = vector.broadcast %133 : vector<1x128xf32> to vector<8x128xf32>
    %135 = arith.addf %131, %134 : vector<8x128xf32>
    %136 = arith.addf %3, %135 : vector<8x128xf32>
    %c0_49 = arith.constant 0 : index
    %c0_50 = arith.constant 0 : index
    %c0_51 = arith.constant 0 : index
    %137 = vector.load %arg11[%c0_49, %c0_50, %c0_51] : memref<1x1x128xf32, #tpu.memory_space<vmem>>, vector<1x1x128xf32>
    %138 = vector.shape_cast %137 : vector<1x1x128xf32> to vector<1x128xf32>
    %c0_52 = arith.constant 0 : index
    %c0_53 = arith.constant 0 : index
    %c0_54 = arith.constant 0 : index
    %139 = vector.load %arg12[%c0_52, %c0_53, %c0_54] : memref<1x1x128xf32, #tpu.memory_space<vmem>>, vector<1x1x128xf32>
    %140 = vector.shape_cast %139 : vector<1x1x128xf32> to vector<1x128xf32>
    %cst_55 = arith.constant dense<0.000000e+00> : vector<8xf32>
    %141 = vector.multi_reduction <add>, %136, %cst_55 [1] : vector<8x128xf32> to vector<8xf32>
    %142 = vector.shape_cast %141 : vector<8xf32> to vector<8x1xf32>
    %cst_56 = arith.constant 1.280000e+02 : f32
    %143 = vector.broadcast %cst_56 : f32 to vector<8x1xf32>
    %144 = arith.divf %142, %143 : vector<8x1xf32>
    %145 = vector.broadcast %144 : vector<8x1xf32> to vector<8x128xf32>
    %146 = arith.subf %136, %145 : vector<8x128xf32>
    %147 = arith.mulf %146, %146 : vector<8x128xf32>
    %cst_57 = arith.constant dense<0.000000e+00> : vector<8xf32>
    %148 = vector.multi_reduction <add>, %147, %cst_57 [1] : vector<8x128xf32> to vector<8xf32>
    %149 = vector.shape_cast %148 : vector<8xf32> to vector<8x1xf32>
    %cst_58 = arith.constant 1.280000e+02 : f32
    %150 = vector.broadcast %cst_58 : f32 to vector<8x1xf32>
    %151 = arith.divf %149, %150 : vector<8x1xf32>
    %152 = vector.broadcast %144 : vector<8x1xf32> to vector<8x128xf32>
    %153 = arith.subf %136, %152 : vector<8x128xf32>
    %cst_59 = arith.constant 9.99999974E-6 : f32
    %154 = vector.broadcast %cst_59 : f32 to vector<8x1xf32>
    %155 = arith.addf %151, %154 : vector<8x1xf32>
    %156 = math.rsqrt %155 : vector<8x1xf32>
    %157 = vector.broadcast %156 : vector<8x1xf32> to vector<8x128xf32>
    %158 = arith.mulf %153, %157 : vector<8x128xf32>
    %159 = vector.broadcast %138 : vector<1x128xf32> to vector<8x128xf32>
    %160 = arith.mulf %158, %159 : vector<8x128xf32>
    %161 = vector.broadcast %140 : vector<1x128xf32> to vector<8x128xf32>
    %162 = arith.addf %160, %161 : vector<8x128xf32>
    %163 = arith.truncf %162 : vector<8x128xf32> to vector<8x128xbf16>
    %c0_60 = arith.constant 0 : index
    %c0_61 = arith.constant 0 : index
    %c0_62 = arith.constant 0 : index
    %164 = vector.load %arg13[%c0_60, %c0_61, %c0_62] : memref<1x128x512xbf16, #tpu.memory_space<vmem>>, vector<1x128x512xbf16>
    %165 = vector.shape_cast %164 : vector<1x128x512xbf16> to vector<128x512xbf16>
    %cst_63 = arith.constant dense<0.000000e+00> : vector<8x512xf32>
    %166 = tpu.matmul %163, %165, %cst_63 {dimension_numbers = #tpu.dot_dimension_numbers<[1], [0], [0], [1], [0, 0, 1, 1], [], []>} : vector<8x128xbf16>, vector<128x512xbf16>, vector<8x512xf32> -> vector<8x512xf32>
    %c0_64 = arith.constant 0 : index
    %c0_65 = arith.constant 0 : index
    %c0_66 = arith.constant 0 : index
    %167 = vector.load %arg14[%c0_64, %c0_65, %c0_66] : memref<1x1x512xf32, #tpu.memory_space<vmem>>, vector<1x1x512xf32>
    %168 = vector.shape_cast %167 : vector<1x1x512xf32> to vector<1x512xf32>
    %169 = vector.broadcast %168 : vector<1x512xf32> to vector<8x512xf32>
    %170 = arith.addf %166, %169 : vector<8x512xf32>
    %cst_67 = arith.constant -1.702000e+00 : f32
    %171 = vector.broadcast %cst_67 : f32 to vector<8x512xf32>
    %172 = arith.mulf %171, %170 : vector<8x512xf32>
    %173 = math.exp %172 : vector<8x512xf32>
    %cst_68 = arith.constant 1.000000e+00 : f32
    %174 = vector.broadcast %cst_68 : f32 to vector<8x512xf32>
    %175 = arith.addf %174, %173 : vector<8x512xf32>
    %176 = tpu.reciprocal %175 {approx = true} : vector<8x512xf32> -> vector<8x512xf32>
    %177 = arith.mulf %170, %176 : vector<8x512xf32>
    %178 = arith.truncf %177 : vector<8x512xf32> to vector<8x512xbf16>
    %c0_69 = arith.constant 0 : index
    %c0_70 = arith.constant 0 : index
    %c0_71 = arith.constant 0 : index
    %179 = vector.load %arg15[%c0_69, %c0_70, %c0_71] : memref<1x512x128xbf16, #tpu.memory_space<vmem>>, vector<1x512x128xbf16>
    %180 = vector.shape_cast %179 : vector<1x512x128xbf16> to vector<512x128xbf16>
    %cst_72 = arith.constant dense<0.000000e+00> : vector<8x128xf32>
    %181 = tpu.matmul %178, %180, %cst_72 {dimension_numbers = #tpu.dot_dimension_numbers<[1], [0], [0], [1], [0, 0, 1, 1], [], []>} : vector<8x512xbf16>, vector<512x128xbf16>, vector<8x128xf32> -> vector<8x128xf32>
    %c0_73 = arith.constant 0 : index
    %c0_74 = arith.constant 0 : index
    %c0_75 = arith.constant 0 : index
    %182 = vector.load %arg16[%c0_73, %c0_74, %c0_75] : memref<1x1x128xf32, #tpu.memory_space<vmem>>, vector<1x1x128xf32>
    %183 = vector.shape_cast %182 : vector<1x1x128xf32> to vector<1x128xf32>
    %184 = vector.broadcast %183 : vector<1x128xf32> to vector<8x128xf32>
    %185 = arith.addf %181, %184 : vector<8x128xf32>
    %186 = arith.addf %136, %185 : vector<8x128xf32>
    %c0_76 = arith.constant 0 : index
    %c0_77 = arith.constant 0 : index
    %187 = vector.load %arg19[%c0_76, %c0_77] : memref<8x128xf32, #tpu.memory_space<vmem>>, vector<8x128xf32>
    tpu.vector_store %arg19[%c0_76, %c0_77], %186 {strides = array<i32>} : memref<8x128xf32, #tpu.memory_space<vmem>>, vector<8x128xf32>,
    %c1_i32 = arith.constant 1 : i32
    %188 = arith.cmpi eq, %arg1, %c1_i32 : i32
    %189 = arith.extui %188 : i1 to i32
    %c0_i32_78 = arith.constant 0 : i32
    %190 = arith.cmpi ne, %189, %c0_i32_78 : i32
    scf.if %190 {
      %c0_79 = arith.constant 0 : index
      %c0_80 = arith.constant 0 : index
      %191 = vector.load %arg17[%c0_79, %c0_80] : memref<1x128xf32, #tpu.memory_space<vmem>>, vector<1x128xf32>
      %c0_81 = arith.constant 0 : index
      %c0_82 = arith.constant 0 : index
      %192 = vector.load %arg18[%c0_81, %c0_82] : memref<1x128xf32, #tpu.memory_space<vmem>>, vector<1x128xf32>
      %cst_83 = arith.constant dense<0.000000e+00> : vector<8xf32>
      %193 = vector.multi_reduction <add>, %186, %cst_83 [1] : vector<8x128xf32> to vector<8xf32>
      %194 = vector.shape_cast %193 : vector<8xf32> to vector<8x1xf32>
      %cst_84 = arith.constant 1.280000e+02 : f32
      %195 = vector.broadcast %cst_84 : f32 to vector<8x1xf32>
      %196 = arith.divf %194, %195 : vector<8x1xf32>
      %197 = vector.broadcast %196 : vector<8x1xf32> to vector<8x128xf32>
      %198 = arith.subf %186, %197 : vector<8x128xf32>
      %199 = arith.mulf %198, %198 : vector<8x128xf32>
      %cst_85 = arith.constant dense<0.000000e+00> : vector<8xf32>
      %200 = vector.multi_reduction <add>, %199, %cst_85 [1] : vector<8x128xf32> to vector<8xf32>
      %201 = vector.shape_cast %200 : vector<8xf32> to vector<8x1xf32>
      %cst_86 = arith.constant 1.280000e+02 : f32
      %202 = vector.broadcast %cst_86 : f32 to vector<8x1xf32>
      %203 = arith.divf %201, %202 : vector<8x1xf32>
      %204 = vector.broadcast %196 : vector<8x1xf32> to vector<8x128xf32>
      %205 = arith.subf %186, %204 : vector<8x128xf32>
      %cst_87 = arith.constant 9.99999974E-6 : f32
      %206 = vector.broadcast %cst_87 : f32 to vector<8x1xf32>
      %207 = arith.addf %203, %206 : vector<8x1xf32>
      %208 = math.rsqrt %207 : vector<8x1xf32>
      %209 = vector.broadcast %208 : vector<8x1xf32> to vector<8x128xf32>
      %210 = arith.mulf %205, %209 : vector<8x128xf32>
      %211 = vector.broadcast %191 : vector<1x128xf32> to vector<8x128xf32>
      %212 = arith.mulf %210, %211 : vector<8x128xf32>
      %213 = vector.broadcast %192 : vector<1x128xf32> to vector<8x128xf32>
      %214 = arith.addf %212, %213 : vector<8x128xf32>
      %c0_88 = arith.constant 0 : index
      %c0_89 = arith.constant 0 : index
      %215 = vector.load %arg19[%c0_88, %c0_89] : memref<8x128xf32, #tpu.memory_space<vmem>>, vector<8x128xf32>
      tpu.vector_store %arg19[%c0_88, %c0_89], %214 {strides = array<i32>} : memref<8x128xf32, #tpu.memory_space<vmem>>, vector<8x128xf32>,
    } else {
    }
    return
  }
  func.func @transform_0(%arg0: i32, %arg1: i32, %arg2: memref<2x8xi32, #tpu.memory_space<smem>>) -> (i32, i32) {
    %c0_i32 = arith.constant 0 : i32
    %c0_i32_0 = arith.constant 0 : i32
    %c0_i32_1 = arith.constant 0 : i32
    return %c0_i32, %c0_i32_0 : i32, i32
  }
  func.func @transform_2(%arg0: i32, %arg1: i32, %arg2: memref<2x8xi32, #tpu.memory_space<smem>>) -> (i32, i32, i32) {
    %c0_i32 = arith.constant 0 : i32
    %c0_i32_0 = arith.constant 0 : i32
    %c0_i32_1 = arith.constant 0 : i32
    return %arg1, %c0_i32, %c0_i32_0 : i32, i32, i32
  }
  func.func @transform_3(%arg0: i32, %arg1: i32, %arg2: memref<2x8xi32, #tpu.memory_space<smem>>) -> (i32, i32, i32) {
    %c0_i32 = arith.constant 0 : i32
    %c0_i32_0 = arith.constant 0 : i32
    %c0_i32_1 = arith.constant 0 : i32
    return %arg1, %c0_i32, %c0_i32_0 : i32, i32, i32
  }
  func.func @transform_4(%arg0: i32, %arg1: i32, %arg2: memref<2x8xi32, #tpu.memory_space<smem>>) -> (i32, i32, i32) {
    %c0_i32 = arith.constant 0 : i32
    %c0_i32_0 = arith.constant 0 : i32
    %c0_i32_1 = arith.constant 0 : i32
    return %arg1, %c0_i32, %c0_i32_0 : i32, i32, i32
  }
  func.func @transform_5(%arg0: i32, %arg1: i32, %arg2: memref<2x8xi32, #tpu.memory_space<smem>>) -> (i32, i32, i32) {
    %c0_i32 = arith.constant 0 : i32
    %c0_i32_0 = arith.constant 0 : i32
    %c0_i32_1 = arith.constant 0 : i32
    return %arg1, %c0_i32, %c0_i32_0 : i32, i32, i32
  }
  func.func @transform_6(%arg0: i32, %arg1: i32, %arg2: memref<2x8xi32, #tpu.memory_space<smem>>) -> (i32, i32, i32) {
    %c0_i32 = arith.constant 0 : i32
    %c0_i32_0 = arith.constant 0 : i32
    %c0_i32_1 = arith.constant 0 : i32
    return %arg1, %c0_i32, %c0_i32_0 : i32, i32, i32
  }
  func.func @transform_7(%arg0: i32, %arg1: i32, %arg2: memref<2x8xi32, #tpu.memory_space<smem>>) -> (i32, i32, i32) {
    %c0_i32 = arith.constant 0 : i32
    %c0_i32_0 = arith.constant 0 : i32
    %c0_i32_1 = arith.constant 0 : i32
    return %arg1, %c0_i32, %c0_i32_0 : i32, i32, i32
  }
  func.func @transform_8(%arg0: i32, %arg1: i32, %arg2: memref<2x8xi32, #tpu.memory_space<smem>>) -> (i32, i32, i32) {
    %c0_i32 = arith.constant 0 : i32
    %c0_i32_0 = arith.constant 0 : i32
    %c0_i32_1 = arith.constant 0 : i32
    return %arg1, %c0_i32, %c0_i32_0 : i32, i32, i32
  }
  func.func @transform_9(%arg0: i32, %arg1: i32, %arg2: memref<2x8xi32, #tpu.memory_space<smem>>) -> (i32, i32, i32) {
    %c0_i32 = arith.constant 0 : i32
    %c0_i32_0 = arith.constant 0 : i32
    %c0_i32_1 = arith.constant 0 : i32
    return %arg1, %c0_i32, %c0_i32_0 : i32, i32, i32
  }
  func.func @transform_10(%arg0: i32, %arg1: i32, %arg2: memref<2x8xi32, #tpu.memory_space<smem>>) -> (i32, i32, i32) {
    %c0_i32 = arith.constant 0 : i32
    %c0_i32_0 = arith.constant 0 : i32
    %c0_i32_1 = arith.constant 0 : i32
    return %arg1, %c0_i32, %c0_i32_0 : i32, i32, i32
  }
  func.func @transform_11(%arg0: i32, %arg1: i32, %arg2: memref<2x8xi32, #tpu.memory_space<smem>>) -> (i32, i32, i32) {
    %c0_i32 = arith.constant 0 : i32
    %c0_i32_0 = arith.constant 0 : i32
    %c0_i32_1 = arith.constant 0 : i32
    return %arg1, %c0_i32, %c0_i32_0 : i32, i32, i32
  }
  func.func @transform_12(%arg0: i32, %arg1: i32, %arg2: memref<2x8xi32, #tpu.memory_space<smem>>) -> (i32, i32, i32) {
    %c0_i32 = arith.constant 0 : i32
    %c0_i32_0 = arith.constant 0 : i32
    %c0_i32_1 = arith.constant 0 : i32
    return %arg1, %c0_i32, %c0_i32_0 : i32, i32, i32
  }
  func.func @transform_13(%arg0: i32, %arg1: i32, %arg2: memref<2x8xi32, #tpu.memory_space<smem>>) -> (i32, i32, i32) {
    %c0_i32 = arith.constant 0 : i32
    %c0_i32_0 = arith.constant 0 : i32
    %c0_i32_1 = arith.constant 0 : i32
    return %arg1, %c0_i32, %c0_i32_0 : i32, i32, i32
  }
  func.func @transform_14(%arg0: i32, %arg1: i32, %arg2: memref<2x8xi32, #tpu.memory_space<smem>>) -> (i32, i32) {
    %c0_i32 = arith.constant 0 : i32
    %c0_i32_0 = arith.constant 0 : i32
    %c0_i32_1 = arith.constant 0 : i32
    return %c0_i32, %c0_i32_0 : i32, i32
  }
  func.func @transform_15(%arg0: i32, %arg1: i32, %arg2: memref<2x8xi32, #tpu.memory_space<smem>>) -> (i32, i32) {
    %c0_i32 = arith.constant 0 : i32
    %c0_i32_0 = arith.constant 0 : i32
    %c0_i32_1 = arith.constant 0 : i32
    return %c0_i32, %c0_i32_0 : i32, i32
  }
  func.func @transform_16(%arg0: i32, %arg1: i32, %arg2: memref<2x8xi32, #tpu.memory_space<smem>>) -> (i32, i32) {
    %c0_i32 = arith.constant 0 : i32
    %c0_i32_0 = arith.constant 0 : i32
    return %arg0, %c0_i32 : i32, i32
  }
}

</mosaic_0001>

<bundles_post_ra>
// kernel: clip_forward.1
= control target key start
LH: loop header
LB: loop body
LE: loop exit
PB: predicated region body
PF: predicated region fallthrough
CT: control target
= control target key end

     0   :  { %s4298_s27 = smov [#allocation5]   ;;  %s5134_s0 = inlined_call_operand.hbm [shape: s32[2,8], index: 0, kind: input, shape index: {}]   ;;  %s5135_s1 = inlined_call_operand.hbm [shape: f32[8,128], index: 1, kind: input, shape index: {}]   ;;  %s5136_s2 = inlined_call_operand.hbm [shape: f32[512,128], index: 2, kind: input, shape index: {}]   ;;  %s5137_s3 = inlined_call_operand.vmem [shape: f32[2,1,128], index: 3, kind: input, shape index: {}]   ;;  %s5138_s4 = inlined_call_operand.hbm [shape: f32[2,1,128], index: 4, kind: input, shape index: {}]   ;;  %s5139_s5 = inlined_call_operand.hbm [shape: bf16[2,128,384], index: 5, kind: input, shape index: {}]   ;;  %s5140_s6 = inlined_call_operand.vmem [shape: f32[2,1,384], index: 6, kind: input, shape index: {}]   ;;  %s5141_s7 = inlined_call_operand.hbm [shape: bf16[2,128,128], index: 7, kind: input, shape index: {}]   ;;  %s5142_s8 = inlined_call_operand.hbm [shape: f32[2,1,128], index: 8, kind: input, shape index: {}]   ;;  %s5143_s9 = inlined_call_operand.vmem [shape: f32[2,1,128], index: 9, kind: input, shape index: {}]   ;;  %s5144_s10 = inlined_call_operand.hbm [shape: f32[2,1,128], index: 10, kind: input, shape index: {}]   ;;  %s5145_s11 = inlined_call_operand.hbm [shape: bf16[2,128,512], index: 11, kind: input, shape index: {}]   ;;  %s5146_s12 = inlined_call_operand.hbm [shape: f32[2,1,512], index: 12, kind: input, shape index: {}]   ;;  %s5147_s13 = inlined_call_operand.hbm [shape: bf16[2,512,128], index: 13, kind: input, shape index: {}]   ;;  %s5148_s14 = inlined_call_operand.hbm [shape: f32[2,1,128], index: 14, kind: input, shape index: {}]   ;;  %s5149_s15 = inlined_call_operand.hbm [shape: f32[1,128], index: 15, kind: input, shape index: {}]   ;;  %s5150_s16 = inlined_call_operand.hbm [shape: f32[1,128], index: 16, kind: input, shape index: {}]   ;;  %s5151_s17 = inlined_call_operand.hbm [shape: f32[16,128], index: 17, kind: output, shape index: {}]  }
   0x1   :  { %5178 = sst [smem:[#allocation79_spill]] %s5134_s0 }
   0x2   :  { %5179 = sst [smem:[#allocation80_spill]] %s5135_s1 }
   0x3   :  { %5180 = sst [smem:[#allocation81_spill]] %s5136_s2 }
   0x4   :  { %5181 = sst [smem:[#allocation82_spill]] %s5137_s3 }
   0x5   :  { %5182 = sst [smem:[#allocation83_spill]] %s5138_s4 }
   0x6   :  { %5183 = sst [smem:[#allocation84_spill]] %s5139_s5 }
   0x7   :  { %5184 = sst [smem:[#allocation85_spill]] %s5140_s6 }
   0x8   :  { %5185 = sst [smem:[#allocation86_spill]] %s5141_s7 }
   0x9   :  { %5186 = sst [smem:[#allocation87_spill]] %s5142_s8 }
   0xa   :  { %5187 = sst [smem:[#allocation88_spill]] %s5143_s9 }
   0xb   :  { %5188 = sst [smem:[#allocation89_spill]] %s5144_s10 }
   0xc   :  { %5189 = sst [smem:[#allocation90_spill]] %s5145_s11 }
   0xd   :  { %5190 = sst [smem:[#allocation91_spill]] %s5146_s12 }
   0xe   :  { %5191 = sst [smem:[#allocation92_spill]] %s5147_s13 }
   0xf   :  { %5192 = sst [smem:[#allocation93_spill]] %s5148_s14 }
  0x10   :  { %5193 = sst [smem:[#allocation94_spill]] %s5149_s15 }
  0x11   :  { %5194 = sst [smem:[#allocation95_spill]] %s5150_s16 }
  0x12   :  { %5195 = sst [smem:[#allocation96_spill]] %s5151_s17 }
  0x13   :  { %s5196_s26 = sld [smem:[#allocation79_spill]] }
  0x19   :  { %s23_s2 = sshll.u32 %s5196_s26, 4  ;;  %s24_s2 = int_to_ptr.hbm [resolvable:$true] %s23_s2 }
  0x1a   :  { %26 = dma.hbm_to_smem %s24_s2, 32, %s4298_s27, [#allocation4] }
  0x1b   :  { %4200 = dma.done.wait [#allocation4], 32 }
  0x1c   :  { %4201 = vsyncadd [#allocation4], 4294967264 }
  0x1d   :  { %29 = sfence }
  0x1e   :  { %30 = vsyncpa [#allocation7], 0 }
  0x1f   :  { %31 = vsyncpa [#allocation10], 0 }
  0x20   :  { %33 = vsyncpa [#allocation10 + $0x1], 0 }
  0x21   :  { %34 = vsyncpa [#allocation13], 0 }
  0x22   :  { %36 = vsyncpa [#allocation13 + $0x1], 0 }
  0x23   :  { %37 = vsyncpa [#allocation16], 0 }
  0x24   :  { %39 = vsyncpa [#allocation16 + $0x1], 0 }
  0x25   :  { %40 = vsyncpa [#allocation19], 0 }
  0x26   :  { %42 = vsyncpa [#allocation19 + $0x1], 0 }
  0x27   :  { %43 = vsyncpa [#allocation22], 0 }
  0x28   :  { %45 = vsyncpa [#allocation22 + $0x1], 0 }
  0x29   :  { %46 = vsyncpa [#allocation25], 0 }
  0x2a   :  { %47 = vsyncpa [#allocation8], 0 }
  0x2b   :  { %49 = vsyncpa [#allocation8 + $0x1], 0  ;;  %s4414_s28 = smov 0   ;;  %s4416_s2 = smov 0  }
  0x2c   :  { %s4418_s29 = smov 0   ;;  %s4420_s0 = smov 0  }
  0x2d   :  { %s4422_s30 = smov 0   ;;  %s4424_s18 = smov 0  }
  0x2e   :  { %s4426_s19 = smov 0   ;;  %s4428_s1 = smov 0  }
  0x2f   :  { %s4430_s20 = smov 0   ;;  %s4432_s21 = smov 0  }
  0x30   :  { %s4434_s22 = smov 0  }
  0x31 LB: > { %5197 = sst [smem:[#allocation63_spill]] %s4256_s28  ;;  %s4468_s23 = sadd.s32 4294967295, %s4296_s22   ;;  %s4296_s22 = sphi %s4434_s22, %s55_s22   ;;  %s4292_s21 = sphi %s4432_s21, %s5274_s21   ;;  %s4288_s20 = sphi %s4430_s20, %s5278_s20   ;;  %s4284_s1 = sphi %s4428_s1, %s5272_s1   ;;  %s4280_s19 = sphi %s4426_s19, %s5277_s19   ;;  %s4276_s18 = sphi %s4424_s18, %s5271_s18   ;;  %s4272_s30 = sphi %s4422_s30, %s5276_s30   ;;  %s4268_s0 = sphi %s4420_s0, %s5275_s0   ;;  %s4264_s29 = sphi %s4418_s29, %s5269_s29   ;;  %s4260_s2 = sphi %s4416_s2, %s5268_s2   ;;  %s4256_s28 = sphi %s4414_s28, %s5267_s28  }
  0x32   : > { %5198 = sst [smem:[#allocation64_spill]] %s4260_s2  ;;  %s2778_s24 = sadd.s32 4294967294, %s4296_s22  }
  0x33   : > { %5199 = sst [smem:[#allocation65_spill]] %s4264_s29  ;;  %s64_s25 = sadd.s32 1, %s4288_s20 }
  0x34   : > { %5200 = sst [smem:[#allocation66_spill]] %s4276_s18  ;;  %s67_s26 = sadd.s32 1, %s4292_s21 }
  0x35   : > { %5201 = sst [smem:[#allocation67_spill]] %s4280_s19  ;;  %p65_p0 = scmp.ge.s32.totalorder %s64_s25, 2 }
  0x36   : > { %5202 = sst [smem:[#allocation68_spill]] %s4284_s1  ;;  %s121_s27 = sadd.s32 1, %s4276_s18 }
  0x37   : > { %5203 = sst [smem:[#allocation69_spill]] %s4292_s21  ;;  %p128_p1 = scmp.ne.s32.totalorder %s4276_s18, %s4272_s30 }
  0x38   : > { %5204 = sst [smem:[#allocation70_spill]] %s4296_s22  ;;  %p129_p2 = scmp.eq.s32.totalorder %s4296_s22, 0 }
  0x39   : > { %s5280_s25 = smov (%p65_p0, %s64_s25), 0  ;;  %s5282_s26 = smov (!%p65_p0, %s67_s26), %s4292_s21 }
  0x3a   : > { %5205 = sst [smem:[#allocation71_spill]] %s5280_s25  ;;  %s118_s17 = ssub.s32 %s4288_s20, %s5280_s25 }
  0x3b   : > { %p4482_p3 = por %p129_p2, %p128_p1  ;;  %p69_p4 = scmp.ge.s32.totalorder %s5282_s26, 2 }
  0x3c   : > { %p119_p5 = scmp.eq.s32.totalorder %s118_s17, 0  ;;  %p134_p6 = scmp.ne.s32.totalorder %s4272_s30, %s4268_s0 }
  0x3d   : > { %p135_p7 = scmp.eq.s32.totalorder %s4468_s23, 0  ;;  %s5284_s26 = smov (%p69_p4, %s5282_s26), 0 }
  0x3e   : > { %5207 = sst [smem:[#allocation72_spill]] %s5284_s26  ;;  %s446_s9 = ssub.s32 %s4292_s21, %s5284_s26 }
  0x3f   : > { %s4491_s6 = scalar_select %p119_p5, %s4276_s18, %s121_s27  }
  0x40   : > { %p4495_p8 = por %p135_p7, %p134_p6  ;;  %p447_p9 = scmp.eq.s32.totalorder %s446_s9, 0 }
  0x41   : > { %5208 = sst [smem:[#allocation73_spill]] %s4491_s6  ;;  %s449_s3 = sadd.s32 1, %s4264_s29 }
  0x42   : > { %s5209_s25 = scalar_select %p4495_p8, 1, 0 }
  0x43   : > { %p459_p10 = scmp.ne.s32.totalorder %s4264_s29, %s4260_s2  ;;  %p460_p11 = scmp.eq.s32.totalorder %s4468_s23, 3 }
  0x44   : > { %5210 = sst [smem:[#allocation74_spill]] %s5209_s25  ;;  %p465_p13 = scmp.ne.s32.totalorder %s4260_s2, %s4256_s28 }
  0x45   : > { %s4506_s17 = scalar_select %p447_p9, %s4264_s29, %s449_s3  }
  0x46   : > { %p4508_p12 = por %p460_p11, %p459_p10  ;;  %p466_p0 = scmp.eq.s32.totalorder %s2778_s24, 3 }
  0x47   : > { %5211 = sst [smem:[#allocation75_spill]] %s4506_s17  ;;  %p2779_p1 = scmp.ge.s32.totalorder %s4296_s22, 1 }
  0x48   : > { %s5212_s0 = scalar_select %p4508_p12, 1, 0 }
  0x49   : > { %p473_p2 = scmp.lt.s32.totalorder %s4296_s22, 5  ;;  %p4516_p4 = por %p466_p0, %p465_p13 }
  0x4a   : > { %5213 = sst [smem:[#allocation76_spill]] %s5212_s0  ;;  %s4299_s24 = smov [#allocation23]  }
  0x4b   : > { %s5214_s9 = scalar_select %p4516_p4, 1, 0 }
  0x4c   : > { %s5216_s15 = sld [smem:[#allocation94_spill]]  ;;  %p4523_p5 = pnand %p2779_p1, %p473_p2 }
  0x4d   : > { %5215 = sst [smem:[#allocation77_spill]] %s5214_s9  ;;  %s499_s6 = sshll.u32 %s4299_s24, 4  ;;  %s500_s6 = int_to_ptr.vmem [resolvable:$true] %s499_s6 }
  0x4e   : > { %p3355_p6 = pneg %p4523_p5  ;;  %p3400_p9 = scmp.lt.s32.totalorder %s4296_s22, 4 }
  0x4f   : > { %s4537_s26 = sand.u32 1, %s4296_s22   ;;  %s4546_s24 = sand.u32 1, %s4276_s18  }
  0x50   : > { %p4532_p10 = pnand %p3355_p6, %p135_p7  ;;  %p4541_p11 = pnand %p3400_p9, %p4482_p3 }
  0x51   : > { %s5220_s4 = sld [smem:[#allocation83_spill]]  ;;  %s531_s28 = scalar_lea.vmem [#allocation9], %s4546_s24 }
  0x52   : > { %s497_s3 = sshll.u32 %s5216_s15, 4  ;;  %s538_s1 = sshll.u32 %s531_s28, 4  ;;  %s498_s3 = int_to_ptr.hbm [resolvable:$true] %s497_s3  ;;  %s539_s1 = int_to_ptr.vmem [resolvable:$true] %s538_s1 }
  0x53   : > { %3361 = dma.hbm_to_vmem [thread:$0]  (!%p4532_p10), %s498_s3, 16, %s500_s6, [#allocation22]  }
  0x54   : > { %s5170_s18 = scalar_lea.sflag [#allocation10], %s4537_s26  ;;  %s2785_s0 = sshll.u32 %s4546_s24, 6 }
  0x55   : > { %s3220_s6 = sshll.u32 %s4288_s20, 6  ;;  %s5221_s7 = sld [smem:[#allocation86_spill]] }
  0x56   : > { %s578_s28 = scalar_lea.vmem [#allocation12], %s2785_s0  ;;  %s5171_s2 = smov 64  }
  0x57   : > { %s534_s9 = scalar_lea.hbm %s5220_s4, %s4288_s20  ;;  %s5174_s4 = scalar_lea.sflag [#allocation13], %s4537_s26 }
  0x58   : > { %s536_s22 = sshll.u32 %s534_s9, 4  ;;  %s586_s9 = sshll.u32 %s578_s28, 4  ;;  %s537_s22 = int_to_ptr.hbm [resolvable:$true] %s536_s22  ;;  %s587_s9 = int_to_ptr.vmem [resolvable:$true] %s586_s9 }
  0x59   : > { %3368 = dma.hbm_to_vmem [thread:$0]  (!%p4541_p11), %s537_s22, 16, %s539_s1, %s5170_s18  }
  0x5a   : > { %s5172_s25 = smov 4   ;;  %s5222_s10 = sld [smem:[#allocation89_spill]] }
  0x5b   : > { %s583_s15 = scalar_lea.hbm %s5221_s7, %s3220_s6  ;;  %s622_s0 = scalar_lea.vmem [#allocation15], %s4546_s24 }
  0x5c   : > { %s584_s29 = sshll.u32 %s583_s15, 4  ;;  %s629_s6 = sshll.u32 %s622_s0, 4  ;;  %s585_s29 = int_to_ptr.hbm [resolvable:$true] %s584_s29  ;;  %s630_s6 = int_to_ptr.vmem [resolvable:$true] %s629_s6 }
  0x5d   : > { %3374 = dma.hbm_to_vmem [thread:$0]  (!%p4541_p11), %s585_s29, 1024, %s587_s9, %s5174_s4, %s5171_s2, %s5171_s2, %s5172_s25  }
  0x5e   : > { %s5173_s15 = scalar_lea.sflag [#allocation16], %s4537_s26  ;;  %s2791_s28 = sshll.u32 %s4546_s24, 2 }
  0x5f   : > { %s2792_s18 = sshll.u32 %s4288_s20, 2  ;;  %s5223_s12 = sld [smem:[#allocation91_spill]] }
  0x60   : > { %s625_s1 = scalar_lea.hbm %s5222_s10, %s4288_s20  ;;  %s662_s2 = scalar_lea.vmem [#allocation18], %s2791_s28 }
  0x61   : > { %s627_s3 = sshll.u32 %s625_s1, 4  ;;  %s670_s25 = sshll.u32 %s662_s2, 4  ;;  %s628_s3 = int_to_ptr.hbm [resolvable:$true] %s627_s3  ;;  %s671_s25 = int_to_ptr.vmem [resolvable:$true] %s670_s25 }
  0x62   : > { %3380 = dma.hbm_to_vmem [thread:$0]  (!%p4541_p11), %s628_s3, 16, %s630_s6, %s5173_s15  }
  0x63   : > { %s5175_s1 = scalar_lea.sflag [#allocation19], %s4537_s26  ;;  %s5224_s3 = sld [smem:[#allocation80_spill]] }
  0x64   : > { %s4302_s4 = smov [#allocation6]   ;;  %s5225_s16 = sld [smem:[#allocation95_spill]] }
  0x65   : > { %s666_s19 = scalar_lea.hbm %s5223_s12, %s2792_s18  ;;  %s487_s29 = sshll.u32 %s4302_s4, 4  ;;  %s488_s29 = int_to_ptr.vmem [resolvable:$true] %s487_s29 }
  0x66   : > { %s668_s22 = sshll.u32 %s666_s19, 4  ;;  %s4303_s9 = smov [#allocation24]   ;;  %s669_s22 = int_to_ptr.hbm [resolvable:$true] %s668_s22 }
  0x67   : > { %3386 = dma.hbm_to_vmem [thread:$0]  (!%p4541_p11), %s669_s22, 64, %s671_s25, %s5175_s1  }
  0x68   : > { %s511_s25 = sshll.u32 %s4303_s9, 4  ;;  %s3319_s19 = smul.u32 192, %s4546_s24  ;;  %s512_s25 = int_to_ptr.vmem [resolvable:$true] %s511_s25 }
  0x69   : > { %s485_s15 = sshll.u32 %s5224_s3, 4  ;;  %s3320_s22 = smul.u32 192, %s4288_s20  ;;  %s486_s15 = int_to_ptr.hbm [resolvable:$true] %s485_s15 }
  0x6a   : > { %s509_s2 = sshll.u32 %s5225_s16, 4  ;;  %s5226_s5 = sld [smem:[#allocation84_spill]]  ;;  %s510_s2 = int_to_ptr.hbm [resolvable:$true] %s509_s2 }
  0x6b   : > { %3358 = dma.hbm_to_vmem [thread:$0]  (!%p4532_p10), %s486_s15, 128, %s488_s29, [#allocation7]  }
  0x6c   : > { %3364 = dma.hbm_to_vmem [thread:$0]  (!%p4532_p10), %s510_s2, 16, %s512_s25, [#allocation25]  }
  0x6d   : > { %s549_s3 = scalar_lea.vmem [#allocation11], %s3319_s19  ;;  %s4304_s18 = smov 192  }
  0x6e   : > { %s557_s29 = sshll.u32 %s549_s3, 4  ;;  %s4305_s28 = smov 12   ;;  %s558_s29 = int_to_ptr.vmem [resolvable:$true] %s557_s29 }
  0x6f   : > { %s5227_s9 = scalar_lea.sflag [#allocation10], %s4537_s26  ;;  %s5228_s8 = sld [smem:[#allocation87_spill]] }
  0x70   : > { %s554_s6 = scalar_lea.hbm %s5226_s5, %s3320_s22  ;;  %s599_s22 = scalar_lea.vmem [#allocation14], %s4546_s24 }
  0x71   : > { %s555_s15 = sshll.u32 %s554_s6, 4  ;;  %s606_s0 = sshll.u32 %s599_s22, 4  ;;  %s556_s15 = int_to_ptr.hbm [resolvable:$true] %s555_s15  ;;  %s607_s0 = int_to_ptr.vmem [resolvable:$true] %s606_s0 }
  0x72   : > { %3371 = dma.hbm_to_vmem [thread:$0]  (!%p4541_p11), %s556_s15, 3072, %s558_s29, %s5227_s9, %s4304_s18, %s4304_s18, %s4305_s28  }
  0x73   : > { %s5229_s19 = scalar_lea.sflag [#allocation13], %s4537_s26  ;;  %s2788_s6 = sshll.u32 %s4546_s24, 8 }
  0x74   : > { %s3221_s3 = sshll.u32 %s4288_s20, 8  ;;  %s5230_s11 = sld [smem:[#allocation90_spill]] }
  0x75   : > { %s602_s25 = scalar_lea.hbm %s5228_s8, %s4288_s20  ;;  %s640_s18 = scalar_lea.vmem [#allocation17], %s2788_s6 }
  0x76   : > { %s604_s4 = sshll.u32 %s602_s25, 4  ;;  %s648_s28 = sshll.u32 %s640_s18, 4  ;;  %s605_s4 = int_to_ptr.hbm [resolvable:$true] %s604_s4  ;;  %s649_s28 = int_to_ptr.vmem [resolvable:$true] %s648_s28 }
  0x77   : > { %3377 = dma.hbm_to_vmem [thread:$0]  (!%p4541_p11), %s605_s4, 16, %s607_s0, %s5229_s19  }
  0x78   : > { %s4306_s9 = smov 256   ;;  %s4307_s17 = smov 16  }
  0x79   : > { %s5231_s2 = scalar_lea.sflag [#allocation16], %s4537_s26  ;;  %s5232_s13 = sld [smem:[#allocation92_spill]] }
  0x7a   : > { %s645_s15 = scalar_lea.hbm %s5230_s11, %s3221_s3  ;;  %s681_s22 = scalar_lea.vmem [#allocation20], %s2788_s6 }
  0x7b   : > { %s646_s29 = sshll.u32 %s645_s15, 4  ;;  %s689_s0 = sshll.u32 %s681_s22, 4  ;;  %s647_s29 = int_to_ptr.hbm [resolvable:$true] %s646_s29  ;;  %s690_s0 = int_to_ptr.vmem [resolvable:$true] %s689_s0 }
  0x7c   : > { %3383 = dma.hbm_to_vmem [thread:$0]  (!%p4541_p11), %s647_s29, 4096, %s649_s28, %s5231_s2, %s4306_s9, %s4306_s9, %s4307_s17  }
  0x7d   : > { %s5233_s19 = smov 4   ;;  %s5234_s15 = smov 64  }
  0x7e   : > { %s5235_s18 = scalar_lea.sflag [#allocation19], %s4537_s26  ;;  %s5236_s14 = sld [smem:[#allocation93_spill]] }
  0x7f   : > { %s686_s5 = scalar_lea.hbm %s5232_s13, %s3221_s3  ;;  %s702_s29 = scalar_lea.vmem [#allocation21], %s4546_s24 }
  0x80   : > { %s687_s1 = sshll.u32 %s686_s5, 4  ;;  %s709_s28 = sshll.u32 %s702_s29, 4  ;;  %s688_s1 = int_to_ptr.hbm [resolvable:$true] %s687_s1  ;;  %s710_s28 = int_to_ptr.vmem [resolvable:$true] %s709_s28 }
  0x81   : > { %3389 = dma.hbm_to_vmem [thread:$0]  (!%p4541_p11), %s688_s1, 4096, %s690_s0, %s5235_s18, %s5234_s15, %s5234_s15, %s5233_s19  }
  0x82   : > { %s700_s3 = scalar_lea.sflag [#allocation22], %s4537_s26  ;;  %718 = sbr.rel (%p4523_p5) target bundleno = 2648 (0xa58), region = 80 }
  0x84   : > { %s705_s10 = scalar_lea.hbm %s5236_s14, %s4288_s20 }
  0x85   : > { %s707_s9 = sshll.u32 %s705_s10, 4  ;;  %s708_s9 = int_to_ptr.hbm [resolvable:$true] %s707_s9 }
  0x86   : > { %3392 = dma.hbm_to_vmem [thread:$0]  (!%p4541_p11), %s708_s9, 16, %s710_s28, %s700_s3  }
  0x87   : > { %4203 = dma.done.wait (%p135_p7), [#allocation7], 128  }
  0x88   : > { %4205 = vsyncadd (%p135_p7), [#allocation7], 4294967168  ;;  %s4655_s8 = sand.u32 1, %s4468_s23   ;;  %s4658_s10 = sand.u32 1, %s4272_s30  }
  0x89   : > { %s726_s26 = scalar_lea.sflag [#allocation10], %s4655_s8 }
  0x8a   : > { %4207 = dma.done.wait (%p4495_p8), %s726_s26, 3088  }
  0x8b   : > { %4209 = vsyncadd (%p4495_p8), %s726_s26, 4294964208  ;;  %s3321_s21 = smul.u32 192, %s4658_s10  ;;  %s2798_s24 = sshll.u32 %s4658_s10, 6 }
  0x8c   : > { %s745_s17 = scalar_lea.sflag [#allocation13], %s4655_s8  ;;  %s4671_s2 = scalar_lea.vmem [#allocation12], %s2798_s24 }
  0x8d   : > { %s4668_s6 = scalar_lea.vmem [#allocation11], %s3321_s21 }
  0x8e   : > { %4211 = dma.done.wait (%p4495_p8), %s745_s17, 1040  }
  0x8f   : > { %4213 = vsyncadd (%p4495_p8), %s745_s17, 4294966256  ;;  %s764_s4 = scalar_lea.sflag [#allocation16], %s4655_s8 }
  0x90   : > { %4215 = dma.done.wait (%p4495_p8), %s764_s4, 4112  }
  0x91   : > { %4217 = vsyncadd (%p4495_p8), %s764_s4, 4294963184  ;;  %s2799_s1 = sshll.u32 %s4658_s10, 8  ;;  %s2800_s22 = sshll.u32 %s4658_s10, 2 }
  0x92   : > { %s4686_s0 = scalar_lea.vmem [#allocation17], %s2799_s1  ;;  %s783_s19 = scalar_lea.sflag [#allocation19], %s4655_s8 }
  0x93   : > { %s4689_s15 = scalar_lea.vmem [#allocation18], %s2800_s22 }
  0x94   : > { %4219 = dma.done.wait (%p4495_p8), %s783_s19, 4160  }
  0x95   : > { %4221 = vsyncadd (%p4495_p8), %s783_s19, 4294963136  ;;  %s4695_s18 = scalar_lea.vmem [#allocation20], %s2799_s1  ;;  %s803_s29 = scalar_lea.sflag [#allocation22], %s4655_s8 }
  0x96   : > { %4223 = dma.done.wait (%p4495_p8), %s803_s29, 16  }
  0x97   : > { %4225 = vsyncadd (%p4495_p8), %s803_s29, 4294967280 }
  0x98   : > { %4227 = dma.done.wait (%p135_p7), [#allocation22], 16  }
  0x99   : > { %4229 = vsyncadd (%p135_p7), [#allocation22], 4294967280 }
  0x9a   : > { %4231 = dma.done.wait (%p135_p7), [#allocation25], 16  }
  0x9b   : > { %4233 = vsyncadd (%p135_p7), [#allocation25], 4294967280  ;;  %s5238_s9 = sld [smem:[#allocation64_spill]] }
  0x9c   : > { %s5239_s3 = sld [smem:[#allocation67_spill]] }
  0x9d   : > { %s5242_s25 = sld [smem:[#allocation85_spill]] }
  0xa1   : > { %s5176_s8 = sand.u32 1, %s5238_s9  }
  0xa2   : > { %p909_p3 = scmp.lt.s32.totalorder %s5239_s3, 1  ;;  %s2804_s7 = sshll.u32 %s5176_s8, 3 }
  0xa3   : > { %s4732_s9 = scalar_lea.vmem [#allocation26], %s2804_s7  ;;  %p2805_p7 = scmp.ne.s32.totalorder %s5239_s3, 0 }
  0xa4   : > { %s4716_s26 = scalar_select %p909_p3, %s5239_s3, 1 }
  0xa5   : > { %923 = sbr.rel (%p2805_p7) target bundleno = 300 (0x12c), region = 132 }
  0xa6   : > { %s3322_s1 = smul.u32 3, %s4716_s26 }
  0xa8   : > { %s4730_s27 = scalar_lea.vmem %s5242_s25, %s3322_s1 }
  0xaa   : > { %s5243_s8 = sld [smem:[#allocation68_spill]]  ;;  %s4308_s17 = smov [#allocation2]  }
  0xab   : > { %s936_s23 = sshll.u32 %s4308_s17, 4  ;;  %s4309_s25 = smov [#allocation2 + $0x1]   ;;  %s937_s23 = int_to_ptr.vmem [resolvable:$true] %s936_s23 }
  0xac   : > { %s4740_s28 = sshll.u32 %s4309_s25, 4  ;;  %s5245_s29 = sld [smem:[#allocation81_spill]] }
  0xad   : > { %5244 = sst [smem:[#allocation78_spill]] %s4740_s28  ;;  %s4310_s12 = smov [#allocation2 + $0x2]  }
  0xae   : > { %s4748_s13 = sshll.u32 %s4310_s12, 4  ;;  %s973_s13 = int_to_ptr.vmem [resolvable:$true] %s4748_s13 }
  0xb0   : > { %s4736_s21 = sshll.u32 %s5243_s8, 7 }
  0xb1   : > { %s925_s24 = sld [smem:[#allocation5 + %s4736_s21]]  ;;  %s940_s22 = sadd.s32 1, %s4736_s21 }
  0xb2   : > { %s941_s5 = sld [smem:[#allocation5 + %s940_s22]]  ;;  %s958_s7 = sadd.s32 2, %s4736_s21 }
  0xb3   : > { %s959_s3 = sld [smem:[#allocation5 + %s958_s7]]  ;;  %s5246_s4 = smov %s5245_s29 }
  0xb4   : > { %s4757_s8 = scalar_lea.hbm %s5246_s4, 512 }
  0xb7   : > { %s926_s11 = scalar_lea.hbm %s5245_s29, %s925_s24 }
  0xb8   : > { %s934_s17 = sshll.u32 %s926_s11, 4  ;;  %s942_s25 = scalar_lea.hbm %s5246_s4, %s941_s5  ;;  %s935_s17 = int_to_ptr.hbm [resolvable:$true] %s934_s17 }
  0xb9   : > { %s3936_s16 = sshra.s32 %s935_s17, 4  ;;  %s3937_s16 = int_to_ptr.hbm [resolvable:$true] %s3936_s16 }
  0xba   : > { %s3938_s28 = scalar_lea.hbm %s3937_s16, 1  ;;  %p3941_p13 = scmp.lt.s32.totalorder %s3937_s16, %s5246_s4 }
  0xbb   : > { %p3939_p8 = scmp.ne.s32.totalorder %s3937_s16, %s3938_s28  ;;  %p3942_p0 = scmp.lt.s32.totalorder %s4757_s8, %s3938_s28 }
  0xbd   : > { %p3943_p1 = por %p3942_p0, %p3941_p13 }
  0xbf   : > { %p3944_p2 = pnand %p3943_p1, %p3939_p8 }
  0xc1   : > { %3947 = shalt.err (!%p3944_p2)  }
  0xc2   : > { %939 = dma.hbm_to_vmem [thread:$0]  %s935_s17, 16, %s937_s23, [#allocation3] }
  0xc3   : > { %s952_s11 = sshll.u32 %s942_s25, 4  ;;  %s960_s5 = scalar_lea.hbm %s5246_s4, %s959_s3  ;;  %s953_s11 = int_to_ptr.hbm [resolvable:$true] %s952_s11 }
  0xc4   : > { %s970_s1 = sshll.u32 %s960_s5, 4  ;;  %s3960_s19 = sshra.s32 %s953_s11, 4  ;;  %s3961_s19 = int_to_ptr.hbm [resolvable:$true] %s3960_s19  ;;  %s971_s1 = int_to_ptr.hbm [resolvable:$true] %s970_s1 }
  0xc5   : > { %s3962_s22 = scalar_lea.hbm %s3961_s19, 1  ;;  %p3965_p6 = scmp.lt.s32.totalorder %s3961_s19, %s5246_s4 }
  0xc6   : > { %p3963_p5 = scmp.ne.s32.totalorder %s3961_s19, %s3962_s22  ;;  %p3966_p9 = scmp.lt.s32.totalorder %s4757_s8, %s3962_s22 }
  0xc8   : > { %p3967_p10 = por %p3966_p9, %p3965_p6 }
  0xca   : > { %p3968_p11 = pnand %p3967_p10, %p3963_p5 }
  0xcc   : > { %3971 = shalt.err (!%p3968_p11)  }
  0xcd   : > { %s5247_s16 = sld [smem:[#allocation78_spill]]  ;;  %s5249_s28 = sadd.s32 3, %s4736_s21 }
  0xce   : > { %s977_s3 = sld [smem:[#allocation5 + %s5249_s28]]  ;;  %s3984_s17 = sshra.s32 %s971_s1, 4  ;;  %s3985_s17 = int_to_ptr.hbm [resolvable:$true] %s3984_s17 }
  0xcf   : > { %s3986_s25 = scalar_lea.hbm %s3985_s17, 1  ;;  %p3989_p7 = scmp.lt.s32.totalorder %s3985_s17, %s5246_s4 }
  0xd0   : > { %p3987_p3 = scmp.ne.s32.totalorder %s3985_s17, %s3986_s25  ;;  %p3990_p8 = scmp.lt.s32.totalorder %s4757_s8, %s3986_s25 }
  0xd2   : > { %p3991_p13 = por %p3990_p8, %p3989_p7 }
  0xd3   : > { %s5248_s23 = int_to_ptr.vmem [resolvable:$true] %s5247_s16 }
  0xd4   : > { %957 = dma.hbm_to_vmem [thread:$0]  %s953_s11, 16, %s5248_s23, [#allocation3 + $0x1] }
  0xd5   : > { %p3992_p0 = pnand %p3991_p13, %p3987_p3 }
  0xd7   : > { %3995 = shalt.err (!%p3992_p0)  }
  0xd8   : > { %975 = dma.hbm_to_vmem [thread:$0]  %s971_s1, 16, %s973_s13, [#allocation3 + $0x2] }
  0xd9   : > { %s994_s11 = sadd.s32 4, %s4736_s21  ;;  %s4311_s24 = smov [#allocation2 + $0x3]  }
  0xda   : > { %s990_s5 = sshll.u32 %s4311_s24, 4  ;;  %s995_s19 = sld [smem:[#allocation5 + %s994_s11]]  ;;  %s991_s5 = int_to_ptr.vmem [resolvable:$true] %s990_s5 }
  0xdb   : > { %s4312_s22 = smov [#allocation2 + $0x4]   ;;  %s1012_s29 = sadd.s32 5, %s4736_s21 }
  0xdc   : > { %s4781_s7 = sshll.u32 %s4312_s22, 4  ;;  %s978_s28 = scalar_lea.hbm %s5246_s4, %s977_s3  ;;  %s1009_s7 = int_to_ptr.vmem [resolvable:$true] %s4781_s7 }
  0xdd   : > { %s988_s17 = sshll.u32 %s978_s28, 4  ;;  %s4788_s25 = sld [smem:[#allocation5 + %s1012_s29]]  ;;  %s989_s17 = int_to_ptr.hbm [resolvable:$true] %s988_s17 }
  0xde   : > { %s4008_s13 = sshra.s32 %s989_s17, 4  ;;  %s4009_s13 = int_to_ptr.hbm [resolvable:$true] %s4008_s13 }
  0xdf   : > { %s4010_s1 = scalar_lea.hbm %s4009_s13, 1  ;;  %p4013_p2 = scmp.lt.s32.totalorder %s4009_s13, %s5246_s4 }
  0xe0   : > { %p4011_p1 = scmp.ne.s32.totalorder %s4009_s13, %s4010_s1  ;;  %p4014_p5 = scmp.lt.s32.totalorder %s4757_s8, %s4010_s1 }
  0xe2   : > { %p4015_p6 = por %p4014_p5, %p4013_p2 }
  0xe4   : > { %p4016_p9 = pnand %p4015_p6, %p4011_p1 }
  0xe6   : > { %4019 = shalt.err (!%p4016_p9)  }
  0xe7   : > { %993 = dma.hbm_to_vmem [thread:$0]  %s989_s17, 16, %s991_s5, [#allocation3 + $0x3] }
  0xe8   : > { %s996_s24 = scalar_lea.hbm %s5246_s4, %s995_s19  ;;  %s4313_s22 = smov [#allocation2 + $0x5]  }
  0xe9   : > { %s4797_s29 = sshll.u32 %s4313_s22, 4  ;;  %s1006_s16 = sshll.u32 %s996_s24, 4  ;;  %s1027_s29 = int_to_ptr.vmem [resolvable:$true] %s4797_s29  ;;  %s1007_s16 = int_to_ptr.hbm [resolvable:$true] %s1006_s16 }
  0xea   : > { %s1030_s23 = sadd.s32 6, %s4736_s21  ;;  %s4032_s28 = sshra.s32 %s1007_s16, 4  ;;  %s4033_s28 = int_to_ptr.hbm [resolvable:$true] %s4032_s28 }
  0xeb   : > { %s4034_s13 = scalar_lea.hbm %s4033_s28, 1  ;;  %p4037_p11 = scmp.lt.s32.totalorder %s4033_s28, %s5246_s4 }
  0xec   : > { %p4035_p10 = scmp.ne.s32.totalorder %s4033_s28, %s4034_s13  ;;  %p4038_p3 = scmp.lt.s32.totalorder %s4757_s8, %s4034_s13 }
  0xee   : > { %p4039_p7 = por %p4038_p3, %p4037_p11 }
  0xf0   : > { %p4040_p8 = pnand %p4039_p7, %p4035_p10 }
  0xf2   : > { %4043 = shalt.err (!%p4040_p8)  }
  0xf3   : > { %1011 = dma.hbm_to_vmem [thread:$0]  %s1007_s16, 16, %s1009_s7, [#allocation3 + $0x4] }
  0xf4   : > { %s1014_s12 = scalar_lea.hbm %s5246_s4, %s4788_s25  ;;  %s1031_s14 = sld [smem:[#allocation5 + %s1030_s23]] }
  0xf5   : > { %s1024_s11 = sshll.u32 %s1014_s12, 4  ;;  %s4314_s3 = smov [#allocation2 + $0x6]   ;;  %s1025_s11 = int_to_ptr.hbm [resolvable:$true] %s1024_s11 }
  0xf6   : > { %s4811_s24 = sshll.u32 %s4314_s3, 4  ;;  %s4056_s22 = sshra.s32 %s1025_s11, 4  ;;  %s4057_s22 = int_to_ptr.hbm [resolvable:$true] %s4056_s22  ;;  %s1045_s24 = int_to_ptr.vmem [resolvable:$true] %s4811_s24 }
  0xf7   : > { %s4058_s28 = scalar_lea.hbm %s4057_s22, 1  ;;  %p4061_p0 = scmp.lt.s32.totalorder %s4057_s22, %s5246_s4 }
  0xf8   : > { %p4059_p13 = scmp.ne.s32.totalorder %s4057_s22, %s4058_s28  ;;  %p4062_p1 = scmp.lt.s32.totalorder %s4757_s8, %s4058_s28 }
  0xfa   : > { %p4063_p2 = por %p4062_p1, %p4061_p0 }
  0xfc   : > { %p4064_p5 = pnand %p4063_p2, %p4059_p13 }
  0xfe   : > { %4067 = shalt.err (!%p4064_p5)  }
  0xff   : > { %1029 = dma.hbm_to_vmem [thread:$0]  %s1025_s11, 16, %s1027_s29, [#allocation3 + $0x5] }
 0x100   : > { %s1048_s7 = sadd.s32 7, %s4736_s21  ;;  %s1032_s5 = scalar_lea.hbm %s5246_s4, %s1031_s14 }
 0x101   : > { %s1049_s25 = sld [smem:[#allocation5 + %s1048_s7]]  ;;  %s1042_s19 = sshll.u32 %s1032_s5, 4  ;;  %s1043_s19 = int_to_ptr.hbm [resolvable:$true] %s1042_s19 }
 0x102   : > { %s4315_s17 = smov [#allocation2 + $0x7]   ;;  %s4080_s3 = sshra.s32 %s1043_s19, 4  ;;  %s4081_s3 = int_to_ptr.hbm [resolvable:$true] %s4080_s3 }
 0x103   : > { %s1062_s12 = sshll.u32 %s4315_s17, 4  ;;  %s4082_s22 = scalar_lea.hbm %s4081_s3, 1  ;;  %s1063_s12 = int_to_ptr.vmem [resolvable:$true] %s1062_s12 }
 0x104   : > { %p4083_p6 = scmp.ne.s32.totalorder %s4081_s3, %s4082_s22  ;;  %p4085_p9 = scmp.lt.s32.totalorder %s4081_s3, %s5246_s4 }
 0x105   : > { %p4086_p10 = scmp.lt.s32.totalorder %s4757_s8, %s4082_s22 }
 0x107   : > { %p4087_p11 = por %p4086_p10, %p4085_p9 }
 0x109   : > { %p4088_p3 = pnand %p4087_p11, %p4083_p6 }
 0x10b   : > { %4091 = shalt.err (!%p4088_p3)  }
 0x10c   : > { %1047 = dma.hbm_to_vmem [thread:$0]  %s1043_s19, 16, %s1045_s24, [#allocation3 + $0x6] }
 0x10d   : > { %s1050_s11 = scalar_lea.hbm %s5246_s4, %s1049_s25 }
 0x10e   : > { %s1060_s13 = sshll.u32 %s1050_s11, 4  ;;  %s1061_s13 = int_to_ptr.hbm [resolvable:$true] %s1060_s13 }
 0x10f   : > { %s4104_s1 = sshra.s32 %s1061_s13, 4  ;;  %s4105_s1 = int_to_ptr.hbm [resolvable:$true] %s4104_s1 }
 0x110   : > { %s4106_s7 = scalar_lea.hbm %s4105_s1, 1  ;;  %p4109_p8 = scmp.lt.s32.totalorder %s4105_s1, %s5246_s4 }
 0x111   : > { %p4107_p7 = scmp.ne.s32.totalorder %s4105_s1, %s4106_s7  ;;  %p4110_p13 = scmp.lt.s32.totalorder %s4757_s8, %s4106_s7 }
 0x113   : > { %p4111_p0 = por %p4110_p13, %p4109_p8 }
 0x115   : > { %p4112_p1 = pnand %p4111_p0, %p4107_p7 }
 0x117   : > { %4115 = shalt.err (!%p4112_p1)  }
 0x118   : > { %1065 = dma.hbm_to_vmem [thread:$0]  %s1061_s13, 16, %s1063_s12, [#allocation3 + $0x7] }
 0x119   : > { %4234 = dma.done.wait [#allocation3], 16 }
 0x11a   : > { %4235 = vsyncadd [#allocation3], 4294967280 }
 0x11b   : > { %4236 = dma.done.wait [#allocation3 + $0x1], 16 }
 0x11c   : > { %4237 = vsyncadd [#allocation3 + $0x1], 4294967280 }
 0x11d   : > { %4238 = dma.done.wait [#allocation3 + $0x2], 16 }
 0x11e   : > { %4239 = vsyncadd [#allocation3 + $0x2], 4294967280 }
 0x11f   : > { %4240 = dma.done.wait [#allocation3 + $0x3], 16 }
 0x120   : > { %4241 = vsyncadd [#allocation3 + $0x3], 4294967280 }
 0x121   : > { %4242 = dma.done.wait [#allocation3 + $0x4], 16 }
 0x122   : > { %4243 = vsyncadd [#allocation3 + $0x4], 4294967280 }
 0x123   : > { %4244 = dma.done.wait [#allocation3 + $0x5], 16 }
 0x124   : > { %4245 = vsyncadd [#allocation3 + $0x5], 4294967280 }
 0x125   : > { %4246 = dma.done.wait [#allocation3 + $0x6], 16 }
 0x126   : > { %4247 = vsyncadd [#allocation3 + $0x6], 4294967280 }
 0x127   : > { %4248 = dma.done.wait [#allocation3 + $0x7], 16 }
 0x128   : > { %4249 = vsyncadd [#allocation3 + $0x7], 4294967280  ;;  %v1083_v0 = vld [vmem:[#allocation2] sm:$0xff]  ;;  %v1084_v1 = vld [vmem:[#allocation6] sm:$0xff] }
 0x129   : > { %v1085_v2 = vadd.f32 %v1084_v1, %v1083_v0 }
 0x12b   : > { %1086 = vst [vmem:[%s4732_s9] sm:$0xff] %v1085_v2 }
 0x12c PF: > { %v4316_v4 = vmov 128.0   ;;  %v2893_v5 = vld [vmem:[%s4668_s6 + $0xa8] sm:$0xf]  ;;  %v3245_v6 = vld [vmem:[%s4668_s6 + $0xb0] sm:$0xf0]  ;;  %s5250_s24 = sld [smem:[#allocation82_spill]] }
 0x12d   : > { %3522 = vrcp.f32 %v4316_v4  ;;  %v3244_v7 = vld [vmem:[%s4668_s6 + $0xac] sm:$0xf]  ;;  %v2894_v8 = vor.u32 %v3245_v6, %v2893_v5  ;;  %v2895_v9 = vld [vmem:[%s4668_s6 + $0xb4] sm:$0xf0]  ;;  %v2901_v10 = vld [vmem:[%s4668_s6 + $0xb0] sm:$0xf] }
 0x12e   : > { %v3246_v11 = vld [vmem:[%s4668_s6 + $0xb8] sm:$0xf0]  ;;  %v2898_v12 = vor.u32 %v3244_v7, %v2895_v9  ;;  %v2881_v24 = vld [vmem:[%s4668_s6 + $0x90] sm:$0xf]  ;;  %v3241_v26 = vld [vmem:[%s4668_s6 + $0x94] sm:$0xf] }
 0x12f   : > { %v2902_v13 = vor.u32 %v3246_v11, %v2901_v10  ;;  %1294 = vmatpush.bf16.msra.mxu0 %v2894_v8  ;;  %v3242_v25 = vld [vmem:[%s4668_s6 + $0x98] sm:$0xf0]  ;;  %v2883_v28 = vld [vmem:[%s4668_s6 + $0x9c] sm:$0xf0]  ;;  %v2889_v29 = vld [vmem:[%s4668_s6 + $0x98] sm:$0xf] }
 0x130   : > { %1307 = vmatpush.bf16.msra.mxu1 %v2898_v12  ;;  %v2882_v27 = vor.u32 %v3242_v25, %v2881_v24  ;;  %v3243_v30 = vld [vmem:[%s4668_s6 + $0xa0] sm:$0xf0]  ;;  %v2886_v31 = vor.u32 %v3241_v26, %v2883_v28  ;;  %v2869_v33 = vld [vmem:[%s4668_s6 + $0x78] sm:$0xf]  ;;  %v3238_v35 = vld [vmem:[%s4668_s6 + $0x7c] sm:$0xf] }
 0x131   : > { %1320 = vmatpush.bf16.msra.mxu2 %v2902_v13  ;;  %v2890_v32 = vor.u32 %v3243_v30, %v2889_v29  ;;  %v3239_v34 = vld [vmem:[%s4668_s6 + $0x80] sm:$0xf0]  ;;  %v2871_v37 = vld [vmem:[%s4668_s6 + $0x84] sm:$0xf0]  ;;  %v2877_v38 = vld [vmem:[%s4668_s6 + $0x80] sm:$0xf] }
 0x132   : > { %v4835_v3 = vld [vmem:[%s4732_s9] sm:$0xff]  ;;  %v2870_v36 = vor.u32 %v3239_v34, %v2869_v33  ;;  %v3240_v39 = vld [vmem:[%s4668_s6 + $0x88] sm:$0xf0]  ;;  %v2874_v40 = vor.u32 %v3238_v35, %v2871_v37  ;;  %v3235_v44 = vld [vmem:[%s4668_s6 + $0x64] sm:$0xf]  ;;  %s5251_s25 = scalar_lea.vmem %s5250_s24, %s4716_s26  ;;  %s5252_s5 = scalar_lea.vmem [#allocation9], %s4658_s10 }
 0x133   : > { %1090 = vadd.xlane.f32.xlu0 %v4835_v3  ;;  %v3523_v14 = vpop.eup %3522  ;;  %1295 = vmatpush.bf16.msra.mxu0 %v2882_v27  ;;  %v2878_v41 = vor.u32 %v3240_v39, %v2877_v38  ;;  %v2857_v42 = vld [vmem:[%s4668_s6 + $0x60] sm:$0xf]  ;;  %v3236_v43 = vld [vmem:[%s4668_s6 + $0x68] sm:$0xf0]  ;;  %v2859_v46 = vld [vmem:[%s4668_s6 + $0x6c] sm:$0xf0] }
 0x134   : > { %v1093_v15 = vmul.f32 128.0, %v3523_v14  ;;  %vm1097_vm0 = vweird.f32 %v3523_v14  ;;  %1308 = vmatpush.bf16.msra.mxu1 %v2886_v31  ;;  %v2858_v45 = vor.u32 %v3236_v43, %v2857_v42  ;;  %v2865_v47 = vld [vmem:[%s4668_s6 + $0x68] sm:$0xf]  ;;  %v3237_v48 = vld [vmem:[%s4668_s6 + $0x70] sm:$0xf0]  ;;  %v2862_v49 = vor.u32 %v3235_v44, %v2859_v46  ;;  %s4317_s19 = smov 64  }
 0x135   : > { %1321 = vmatpush.bf16.msra.mxu2 %v2890_v32  ;;  %v2866_v50 = vor.u32 %v3237_v48, %v2865_v47  ;;  %v2845_v51 = vld [vmem:[%s4668_s6 + $0x48] sm:$0xf]  ;;  %v3233_v52 = vld [vmem:[%s4668_s6 + $0x50] sm:$0xf0]  ;;  %v3232_v53 = vld [vmem:[%s4668_s6 + $0x4c] sm:$0xf] }
 0x136   : > { %v1094_v16 = vsub.f32 1.0, %v1093_v15  ;;  %v2846_v54 = vor.u32 %v3233_v52, %v2845_v51  ;;  %v2847_v55 = vld [vmem:[%s4668_s6 + $0x54] sm:$0xf0]  ;;  %v2853_v56 = vld [vmem:[%s4668_s6 + $0x50] sm:$0xf]  ;;  %vm1356_vm4 = vcmask 261120  }
 0x137   : > { %1296 = vmatpush.bf16.msra.mxu0 %v2870_v36  ;;  %v3234_v57 = vld [vmem:[%s4668_s6 + $0x58] sm:$0xf0]  ;;  %v2850_v58 = vor.u32 %v3232_v53, %v2847_v55  ;;  %v2833_v60 = vld [vmem:[%s4668_s6 + $0x30] sm:$0xf]  ;;  %v3229_v62 = vld [vmem:[%s4668_s6 + $0x34] sm:$0xf] }
 0x138   : > { %v1095_v17 = vmul.f32 %v3523_v14, %v1094_v16  ;;  %1309 = vmatpush.bf16.msra.mxu1 %v2874_v40  ;;  %v2854_v59 = vor.u32 %v3234_v57, %v2853_v56  ;;  %v3230_v61 = vld [vmem:[%s4668_s6 + $0x38] sm:$0xf0]  ;;  %v2835_v0 = vld [vmem:[%s4668_s6 + $0x3c] sm:$0xf0]  ;;  %v2841_v1 = vld [vmem:[%s4668_s6 + $0x38] sm:$0xf] }
 0x139   : > { %1322 = vmatpush.bf16.msra.mxu2 %v2878_v41  ;;  %v2834_v63 = vor.u32 %v3230_v61, %v2833_v60  ;;  %v3231_v2 = vld [vmem:[%s4668_s6 + $0x40] sm:$0xf0]  ;;  %v2838_v4 = vor.u32 %v3229_v62, %v2835_v0  ;;  %v2821_v6 = vld [vmem:[%s4668_s6 + $0x18] sm:$0xf]  ;;  %v3226_v8 = vld [vmem:[%s4668_s6 + $0x1c] sm:$0xf] }
 0x13a   : > { %v1096_v18 = vadd.f32 %v3523_v14, %v1095_v17  ;;  %v2842_v5 = vor.u32 %v3231_v2, %v2841_v1  ;;  %v3227_v7 = vld [vmem:[%s4668_s6 + $0x20] sm:$0xf0]  ;;  %v2823_v10 = vld [vmem:[%s4668_s6 + $0x24] sm:$0xf0]  ;;  %v2829_v11 = vld [vmem:[%s4668_s6 + $0x20] sm:$0xf] }
 0x13b   : > { %1297 = vmatpush.bf16.msra.mxu0 %v2858_v45  ;;  %v2822_v9 = vor.u32 %v3227_v7, %v2821_v6  ;;  %v3228_v12 = vld [vmem:[%s4668_s6 + $0x28] sm:$0xf0]  ;;  %v2826_v13 = vor.u32 %v3226_v8, %v2823_v10  ;;  %v2809_v15 = vld [vmem:[%s4668_s6] sm:$0xf]  ;;  %v3223_v17 = vld [vmem:[%s4668_s6 + $0x4] sm:$0xf] }
 0x13c   : > { %v4844_v19 = vsel %vm1097_vm0, %v3523_v14, %v1096_v18  ;;  %1310 = vmatpush.bf16.msra.mxu1 %v2862_v49  ;;  %v2830_v14 = vor.u32 %v3228_v12, %v2829_v11  ;;  %v3224_v16 = vld [vmem:[%s4668_s6 + $0x8] sm:$0xf0]  ;;  %s4318_s17 = smov 96   ;;  %v4320_v62 = vmov -1e+30   ;;  %vm1383_vm6 = vcmask 64512  }
 0x13d   : > { %1323 = vmatpush.bf16.msra.mxu2 %v2866_v50  ;;  %v2810_v18 = vor.u32 %v3224_v16, %v2809_v15  ;;  %v3516_v35 = vld [vmem:[%s5251_s25] ss:$0 sm:$0xff]  ;;  %v3247_v15 = vld [vmem:[%s4671_s2] sm:$0xff]  ;;  %s5254_s3 = sld [smem:[#allocation88_spill]]  ;;  %s5256_s28 = scalar_lea.vmem [#allocation15], %s4658_s10 }
 0x13e   : > { %v3517_v38 = vld [vmem:[%s5252_s5] ss:$0 sm:$0xff] }
 0x13f   : > { %1298 = vmatpush.bf16.msra.mxu0 %v2846_v54  ;;  %v1158_v42 = vld [vmem:[%s4730_s27] sm:$0x7]  ;;  %s4319_s27 = smov 32  }
 0x140   : > { %1311 = vmatpush.bf16.msra.mxu1 %v2850_v58  ;;  %v1160_v43 = vperm.slane %v1158_v42, 0  ;;  %v1161_v44 = vperm.slane %v1158_v42, 1  ;;  %v3248_v10 = vld [vmem:[%s4671_s2 + $0x8] sm:$0xff] }
 0x141   : > { %1324 = vmatpush.bf16.msra.mxu2 %v2854_v59  ;;  %v1334_v59 = vlaneseq }
 0x143   : > { %1299 = vmatpush.bf16.msra.mxu0 %v2834_v63  ;;  %v1335_v60 = vshrl.u32 %v1334_v59, 7  ;;  %v1337_v61 = vand.u32 127, %v1334_v59  ;;  %v3252_v59 = vld [vmem:[%s4671_s2 + $0x28] sm:$0xff]  ;;  %s5255_s22 = scalar_lea.vmem %s5254_s3, %s4716_s26 }
 0x144   : > { %1312 = vmatpush.bf16.msra.mxu1 %v2838_v4 }
 0x145   : > { %1325 = vmatpush.bf16.msra.mxu2 %v2842_v5  ;;  %vm1338_vm5 = vcmp.le.s32.totalorder %v1337_v61, %v1335_v60  ;;  %v3254_v60 = vld [vmem:[%s4671_s2 + $0x38] sm:$0xff]  ;;  %v3251_v61 = vld [vmem:[%s4671_s2 + $0x20] sm:$0xff] }
 0x146   : > { %v1339_v63 = vsel %vm1338_vm5, 0.0, %v4320_v62  ;;  %v3253_v62 = vld [vmem:[%s4671_s2 + $0x30] sm:$0xff] }
 0x147   : > { %1300 = vmatpush.bf16.msra.mxu0 %v2822_v9 }
 0x148   : > { %1313 = vmatpush.bf16.msra.mxu1 %v2826_v13 }
 0x149   : > { %1326 = vmatpush.bf16.msra.mxu2 %v2830_v14 }
 0x14b   : > { %1301 = vmatpush.bf16.msra.mxu0 %v2810_v18 }
 0x14f   : > { %1535 = vmatpush.bf16.msrb.mxu0 %v3248_v10 }
 0x153   : > { %1536 = vmatpush.bf16.msrb.mxu0 %v3247_v15 }
 0x1a6   : > { %v1091_v20 = vpop.xlane.xlu0 %1090 }
 0x1a7   : > { %v1099_v21 = vmul.f32 %v4844_v19, %v1091_v20  ;;  %v2811_v20 = vld [vmem:[%s4668_s6 + $0xc] sm:$0xf0] }
 0x1a8   : > { %v2814_v24 = vor.u32 %v3223_v17, %v2811_v20 }
 0x1a9   : > { %v4848_v22 = vsub.f32 %v4835_v3, %v1099_v21  ;;  %v2817_v21 = vld [vmem:[%s4668_s6 + $0x8] sm:$0xf] }
 0x1aa   : > { %1314 = vmatpush.bf16.msra.mxu1 %v2814_v24 }
 0x1ab   : > { %v1101_v23 = vmul.f32 %v4848_v22, %v4848_v22 }
 0x1ad   : > { %1102 = vadd.xlane.f32.xlu0 %v1101_v23  ;;  %v3225_v23 = vld [vmem:[%s4668_s6 + $0x10] sm:$0xf0] }
 0x1ae   : > { %v2818_v25 = vor.u32 %v3225_v23, %v2817_v21 }
 0x1b0   : > { %1327 = vmatpush.bf16.msra.mxu2 %v2818_v25 }
 0x220   : > { %v1103_v26 = vpop.xlane.xlu0 %1102 }
 0x221   : > { %v1104_v27 = vmul.f32 %v1103_v26, %v4844_v19 }
 0x223   : > { %v1105_v28 = vadd.f32 1e-05, %v1104_v27 }
 0x225   : > { %3524 = vrsqrt.f32 %v1105_v28  ;;  %vm1112_vm2 = vweird.f32 %v1105_v28 }
 0x22b   : > { %v3525_v29 = vpop.eup %3524 }
 0x22c   : > { %v1107_v30 = vmul.f32 %v3525_v29, %v1105_v28  ;;  %vm1113_vm1 = vweird.f32 %v3525_v29 }
 0x22d   : > { %vm1114_vm3 = vmor %vm1112_vm2, %vm1113_vm1 }
 0x22e   : > { %v1108_v31 = vmul.f32 %v3525_v29, %v1107_v30 }
 0x230   : > { %v1109_v32 = vmul.f32 0.5, %v1108_v31 }
 0x232   : > { %v1110_v33 = vsub.f32 1.5, %v1109_v32 }
 0x234   : > { %v1111_v34 = vmul.f32 %v3525_v29, %v1110_v33 }
 0x236   : > { %v1115_v36 = vsel %vm1114_vm3, %v3525_v29, %v1111_v34 }
 0x237   : > { %v1116_v37 = vmul.f32 %v1115_v36, %v4848_v22  ;;  %v1162_v22 = vperm.slane %v1158_v42, 2 }
 0x239   : > { %v1120_v39 = vmul.f32 %v3516_v35, %v1116_v37 }
 0x23b   : > { %v1124_v40 = vadd.f32 %v3517_v38, %v1120_v39 }
 0x23d   : > { %v1125_v41 = vpack.c.bf16 %v1124_v40, %v1124_v40 }
 0x23f   : > { %1302 = vmatmul.bf16.vlgmr.msra.gmra.mxu0 %v1125_v41  ;;  %1315 = vmatmul.bf16.vlgmr.msra.gmra.mxu1 %v1125_v41 }
 0x240   : > { %1328 = vmatmul.bf16.vlgmr.msra.gmra.mxu2 %v1125_v41  ;;  %1724 = vmatpush.bf16.msra.mxu0 %v3254_v60  ;;  %v3271_v60 = vld [vmem:[%s4686_s0 + $0x84] sm:$0xf] }
 0x244   : > { %1725 = vmatpush.bf16.msra.mxu0 %v3253_v62  ;;  %v3019_v62 = vld [vmem:[%s4686_s0 + $0x90] sm:$0xf0] }
 0x2bc   : > { %v1303_v45 = vpop.f32.mrf.mxu0  ;;  %v1316_v46 = vpop.f32.mrf.mxu1 }
 0x2bd   : > { %v1304_v47 = vadd.f32 %v1303_v45, %v1160_v43  ;;  %v1317_v48 = vadd.f32 %v1316_v46, %v1161_v44 }
 0x2bf   : > { %v1333_v49 = vmul.f32 0.17677669, %v1304_v47  ;;  %1544 = vrot.lane.b32.xlu0 %v1317_v48, %s4317_s19  ;;  %1421 = vrot.lane.b32.xlu2 %v1317_v48, %s4318_s17 }
 0x2c0   : > { %2903 = vmatpush.xpose.msk.msra.mxu3 %vm1356_vm4, %v1317_v48 }
 0x2c3   : > { %v1329_v50 = vpop.f32.mrf.mxu2  ;;  %2904 = vmatmul.msk.f32.vlgmr.msra.gmra.mxu3 %vm1356_vm4, %v1333_v49 }
 0x2c4   : > { %v4908_v51 = vadd.f32 %v1329_v50, %v1162_v22  ;;  %v1305_v52 = vpop.f32.mrf.mxu0  ;;  %v1318_v53 = vpop.f32.mrf.mxu1 }
 0x2c6   : > { %1413 = vmatpush.msrb.mxu3 %v4908_v51 }
 0x2c7   : > { %1419 = vrot.lane.b32.xlu2 %v1333_v49, %s4318_s17 }
 0x2cb   : > { %v1331_v54 = vpop.f32.mrf.mxu2 }
 0x2cf   : > { %1639 = vrot.lane.b32.xlu2 %v1317_v48, %s4319_s27  ;;  %v3250_v48 = vld [vmem:[%s4671_s2 + $0x18] sm:$0xff] }
 0x2d7   : > { %1637 = vrot.lane.b32.xlu2 %v1333_v49, %s4319_s27 }
 0x319   : > { %v1422_v55 = vpop.permute.xlu2 %1421 }
 0x31a   : > { %2906 = vmatpush.xpose.msk.msra.mxu3 %vm1356_vm4, %v1422_v55 }
 0x321   : > { %v1420_v56 = vpop.permute.xlu2 %1419 }
 0x329   : > { %v1640_v58 = vpop.permute.xlu2 %1639 }
 0x331   : > { %v1545_v57 = vpop.permute.xlu0 %1544  ;;  %v1638_v14 = vpop.permute.xlu2 %1637 }
 0x332   : > { %2927 = vmatpush.xpose.msk.msrb.mxu1 %vm1356_vm4, %v1545_v57 }
 0x336   : > { %2939 = vmatpush.xpose.msk.msra.mxu1 %vm1356_vm4, %v1640_v58 }
 0x346   : > { %v1380_v0 = vpop.f32.mrf.mxu3 }
 0x347   : > { %v1381_v1 = vadd.f32 %v1380_v0, %v1339_v63 }
 0x349   : > { %v1384_v2 = vsel %vm1383_vm6, %v1381_v1, -inf }
 0x34a   : > { %1385 = vmax.xlane.f32.xlu1 %v1384_v2 }
 0x3bd   : > { %v1386_v4 = vpop.xlane.xlu1 %1385 }
 0x3be   : > { %v1387_v5 = vsub.f32 %v1381_v1, %v1386_v4 }
 0x3c0   : > { %v1388_v6 = vmul.f32 1.442695, %v1387_v5 }
 0x3c2   : > { %3526 = vpow2.f32 %v1388_v6 }
 0x3c8   : > { %v3527_v7 = vpop.eup %3526 }
 0x3c9   : > { %v1390_v8 = vsel %vm1383_vm6, %v3527_v7, 0.0 }
 0x3ca   : > { %1391 = vadd.xlane.f32.xlu1 %v1390_v8 }
 0x3e3   : > { %1542 = vrot.lane.b32.xlu1 %v1333_v49, %s4317_s19  ;;  %v3249_v49 = vld [vmem:[%s4671_s2 + $0x10] sm:$0xff]  ;;  %s5253_s2 = scalar_lea.vmem [#allocation14], %s4658_s10 }
 0x43d   : > { %v1392_v9 = vpop.xlane.xlu1 %1391 }
 0x43e   : > { %3528 = vrcp.f32 %v1392_v9 }
 0x444   : > { %v3529_v11 = vpop.eup %3528 }
 0x445   : > { %v1394_v12 = vmul.f32 %v3529_v11, %v3527_v7 }
 0x447   : > { %2905 = vmatmul.msk.f32.vlgmr.msrb.gmra.mxu3 %vm1383_vm6, %v1394_v12  ;;  %v3518_v12 = vld [vmem:[%s5253_s2] ss:$0 sm:$0xff] }
 0x44f   : > { %2907 = vmatmul.msk.f32.vlgmr.msra.gmra.mxu3 %vm1356_vm4, %v1420_v56 }
 0x455   : > { %v1543_v13 = vpop.permute.xlu1 %1542 }
 0x456   : > { %2928 = vmatmul.msk.f32.vlgmr.msrb.gmra.mxu1 %vm1356_vm4, %v1543_v13 }
 0x45e   : > { %2940 = vmatmul.msk.f32.vlgmr.msra.gmra.mxu1 %vm1356_vm4, %v1638_v14 }
 0x4ca   : > { %v1415_v16 = vpop.f32.mrf.mxu3 }
 0x4cb   : > { %v1418_v17 = vpack.c.bf16 %v1415_v16, %v1415_v16 }
 0x4cd   : > { %2926 = vmatmul.msk.bf16.vlgmr.msrb.gmra.mxu0 %vm1356_vm4, %v1418_v17 }
 0x4d2   : > { %v1444_v18 = vpop.f32.mrf.mxu3 }
 0x4d3   : > { %v1445_v20 = vadd.f32 %v1444_v18, %v1339_v63  ;;  %v1567_v21 = vpop.f32.mrf.mxu1  ;;  %v3065_v18 = vld [vmem:[%s4686_s0 + $0xe0] sm:$0xf] }
 0x4d4   : > { %v1568_v23 = vadd.f32 %v1567_v21, %v1339_v63  ;;  %v3283_v21 = vld [vmem:[%s4686_s0 + $0xe4] sm:$0xf] }
 0x4d5   : > { %v1447_v24 = vsel %vm1383_vm6, %v1445_v20, -inf }
 0x4d6   : > { %1448 = vmax.xlane.f32.xlu2 %v1447_v24  ;;  %v1570_v25 = vsel %vm1383_vm6, %v1568_v23, -inf  ;;  %v3067_v24 = vld [vmem:[%s4686_s0 + $0xf0] sm:$0xf0] }
 0x4d7   : > { %1571 = vmax.xlane.f32.xlu0 %v1570_v25  ;;  %v3073_v25 = vld [vmem:[%s4686_s0 + $0xe8] sm:$0xf] }
 0x4db   : > { %v1662_v26 = vpop.f32.mrf.mxu1 }
 0x4dc   : > { %v1663_v27 = vadd.f32 %v1662_v26, %v1339_v63  ;;  %v3286_v26 = vld [vmem:[%s4686_s0 + $0xf4] sm:$0xf0] }
 0x4de   : > { %v1665_v28 = vsel %vm1383_vm6, %v1663_v27, -inf }
 0x4df   : > { %1666 = vmax.xlane.f32.xlu1 %v1665_v28  ;;  %v3074_v28 = vor.u32 %v3286_v26, %v3073_v25  ;;  %v2987_v26 = vld [vmem:[%s4686_s0 + $0x50] sm:$0xf0] }
 0x4eb   : > { %1459 = vrot.lane.b32.xlu0 %v4908_v51, %s4318_s17 }
 0x549   : > { %v1449_v29 = vpop.xlane.xlu2 %1448 }
 0x54a   : > { %v4932_v30 = vpop.f32.mrf.mxu0  ;;  %v1572_v31 = vpop.xlane.xlu0 %1571  ;;  %v1450_v33 = vsub.f32 %v1445_v20, %v1449_v29  ;;  %v3285_v20 = vld [vmem:[%s4686_s0 + $0xec] sm:$0xf0]  ;;  %v3284_v29 = vld [vmem:[%s4686_s0 + $0xec] sm:$0xf] }
 0x54b   : > { %v1573_v32 = vsub.f32 %v1568_v23, %v1572_v31  ;;  %v3066_v23 = vor.u32 %v3285_v20, %v3065_v18  ;;  %v3011_v18 = vld [vmem:[%s4686_s0 + $0x78] sm:$0xf0] }
 0x54c   : > { %v1451_v35 = vmul.f32 1.442695, %v1450_v33 }
 0x54d   : > { %v1574_v34 = vmul.f32 1.442695, %v1573_v32 }
 0x54f   : > { %3530 = vpow2.f32 %v1574_v34 }
 0x550   : > { %3532 = vpow2.f32 %v1451_v35  ;;  %v3049_v35 = vld [vmem:[%s4686_s0 + $0xc0] sm:$0xf] }
 0x552   : > { %v1540_v36 = vpop.f32.mrf.mxu0  ;;  %v1667_v37 = vpop.xlane.xlu1 %1666 }
 0x553   : > { %v1668_v38 = vsub.f32 %v1663_v27, %v1667_v37  ;;  %v3070_v27 = vor.u32 %v3283_v21, %v3067_v24  ;;  %v3281_v36 = vld [vmem:[%s4686_s0 + $0xcc] sm:$0xf0]  ;;  %v3279_v37 = vld [vmem:[%s4686_s0 + $0xc4] sm:$0xf]  ;;  %v2985_v21 = vld [vmem:[%s4686_s0 + $0x40] sm:$0xf] }
 0x554   : > { %v3263_v24 = vld [vmem:[%s4686_s0 + $0x44] sm:$0xf] }
 0x555   : > { %v3531_v39 = vpop.eup %3530  ;;  %v1669_v40 = vmul.f32 1.442695, %v1668_v38  ;;  %1984 = vmatpush.bf16.msrb.mxu1 %v3070_v27  ;;  %v3050_v38 = vor.u32 %v3281_v36, %v3049_v35  ;;  %v2993_v27 = vld [vmem:[%s4686_s0 + $0x48] sm:$0xf]  ;;  %v3261_v35 = vld [vmem:[%s4686_s0 + $0x2c] sm:$0xf0] }
 0x556   : > { %v1576_v41 = vsel %vm1383_vm6, %v3531_v39, 0.0  ;;  %v3533_v42 = vpop.eup %3532  ;;  %v3259_v36 = vld [vmem:[%s4686_s0 + $0x24] sm:$0xf] }
 0x557   : > { %3534 = vpow2.f32 %v1669_v40  ;;  %1577 = vadd.xlane.f32.xlu2 %v1576_v41  ;;  %v1453_v46 = vsel %vm1383_vm6, %v3533_v42, 0.0  ;;  %v3057_v40 = vld [vmem:[%s4686_s0 + $0xc8] sm:$0xf]  ;;  %v3282_v41 = vld [vmem:[%s4686_s0 + $0xd4] sm:$0xf0] }
 0x55d   : > { %v3535_v43 = vpop.eup %3534  ;;  %v1460_v44 = vpop.permute.xlu0 %1459 }
 0x55e   : > { %1480 = vmatpush.msrb.mxu3 %v1460_v44  ;;  %v1671_v45 = vsel %vm1383_vm6, %v3535_v43, 0.0  ;;  %v3280_v44 = vld [vmem:[%s4686_s0 + $0xcc] sm:$0xf] }
 0x55f   : > { %1672 = vadd.xlane.f32.xlu1 %v1671_v45  ;;  %1454 = vadd.xlane.f32.xlu2 %v1453_v46  ;;  %v3059_v45 = vld [vmem:[%s4686_s0 + $0xd8] sm:$0xf0] }
 0x560   : > { %1507 = vmatpush.bf16.msra.mxu3 %v3250_v48  ;;  %v3062_v46 = vor.u32 %v3280_v44, %v3059_v45  ;;  %v3277_v48 = vld [vmem:[%s4686_s0 + $0xac] sm:$0xf0]  ;;  %v2979_v44 = vld [vmem:[%s4686_s0 + $0x38] sm:$0xf0]  ;;  %v2953_v45 = vld [vmem:[%s4686_s0] sm:$0xf] }
 0x564   : > { %1508 = vmatpush.bf16.msra.mxu3 %v3249_v49  ;;  %v3275_v49 = vld [vmem:[%s4686_s0 + $0xa4] sm:$0xf] }
 0x577   : > { %1581 = vrot.lane.b32.xlu2 %v4908_v51, %s4317_s19 }
 0x578   : > { %1676 = vrot.lane.b32.xlu1 %v4908_v51, %s4319_s27 }
 0x5ca   : > { %v1578_v47 = vpop.xlane.xlu2 %1577 }
 0x5cb   : > { %3536 = vrcp.f32 %v1578_v47  ;;  %v3033_v47 = vld [vmem:[%s4686_s0 + $0xa0] sm:$0xf] }
 0x5d1   : > { %v3537_v50 = vpop.eup %3536 }
 0x5d2   : > { %v1455_v22 = vpop.xlane.xlu2 %1454  ;;  %v1580_v54 = vmul.f32 %v3537_v50, %v3531_v39  ;;  %v1673_v51 = vpop.xlane.xlu1 %1672  ;;  %v3051_v39 = vld [vmem:[%s4686_s0 + $0xd0] sm:$0xf0] }
 0x5d3   : > { %3538 = vrcp.f32 %v1455_v22  ;;  %v3034_v22 = vor.u32 %v3277_v48, %v3033_v47  ;;  %v3035_v50 = vld [vmem:[%s4686_s0 + $0xb0] sm:$0xf0]  ;;  %v3257_v47 = vld [vmem:[%s4686_s0 + $0xc] sm:$0xf0]  ;;  %v3255_v48 = vld [vmem:[%s4686_s0 + $0x4] sm:$0xf] }
 0x5d4   : > { %3540 = vrcp.f32 %v1673_v51  ;;  %v3276_v51 = vld [vmem:[%s4686_s0 + $0xac] sm:$0xf] }
 0x5d9   : > { %v3539_v52 = vpop.eup %3538 }
 0x5da   : > { %v1582_v53 = vpop.permute.xlu2 %1581  ;;  %v1457_v55 = vmul.f32 %v3539_v52, %v3533_v42  ;;  %v3541_v56 = vpop.eup %3540  ;;  %v3054_v42 = vor.u32 %v3279_v37, %v3051_v39  ;;  %v3041_v52 = vld [vmem:[%s4686_s0 + $0xa8] sm:$0xf] }
 0x5db   : > { %1602 = vmatpush.msrb.mxu2 %v1582_v53  ;;  %v1675_v57 = vmul.f32 %v3541_v56, %v3535_v43  ;;  %v3058_v43 = vor.u32 %v3282_v41, %v3057_v40  ;;  %v3278_v53 = vld [vmem:[%s4686_s0 + $0xb4] sm:$0xf0]  ;;  %v3043_v56 = vld [vmem:[%s4686_s0 + $0xb8] sm:$0xf0]  ;;  %v2977_v39 = vld [vmem:[%s4686_s0 + $0x28] sm:$0xf] }
 0x5dc   : > { %2929 = vmatmul.msk.f32.vlgmr.msrb.gmra.mxu2 %vm1383_vm6, %v1580_v54  ;;  %2908 = vmatmul.msk.f32.vlgmr.msrb.gmra.mxu3 %vm1383_vm6, %v1457_v55  ;;  %v3038_v54 = vor.u32 %v3275_v49, %v3035_v50  ;;  %v3042_v55 = vor.u32 %v3278_v53, %v3041_v52  ;;  %v3262_v40 = vld [vmem:[%s4686_s0 + $0x34] sm:$0xf0]  ;;  %v2955_v49 = vld [vmem:[%s4686_s0 + $0x10] sm:$0xf0]  ;;  %v2961_v52 = vld [vmem:[%s4686_s0 + $0x8] sm:$0xf] }
 0x5dd   : > { %1629 = vmatpush.bf16.msrb.mxu3 %v3252_v59  ;;  %1985 = vmatpush.bf16.msrb.mxu1 %v3054_v42  ;;  %v3273_v59 = vld [vmem:[%s4686_s0 + $0x8c] sm:$0xf0]  ;;  %v2978_v42 = vor.u32 %v3262_v40, %v2977_v39  ;;  %v2958_v50 = vor.u32 %v3255_v48, %v2955_v49  ;;  %v3258_v53 = vld [vmem:[%s4686_s0 + $0x14] sm:$0xf0]  ;;  %v3311_v39 = vld [vmem:[%s4695_s18 + $0xc0] sm:$0xff] }
 0x5de   : > { %v3288_v40 = vld [vmem:[%s4695_s18 + $0x8] sm:$0xff] }
 0x5e1   : > { %1630 = vmatpush.bf16.msrb.mxu3 %v3251_v61  ;;  %1986 = vmatpush.bf16.msrb.mxu1 %v3038_v54  ;;  %v3256_v54 = vld [vmem:[%s4686_s0 + $0xc] sm:$0xf] }
 0x5ea   : > { %v1677_v58 = vpop.permute.xlu1 %1676 }
 0x5eb   : > { %1697 = vmatpush.msra.mxu2 %v1677_v58  ;;  %v3017_v58 = vld [vmem:[%s4686_s0 + $0x80] sm:$0xf] }
 0x5ec   : > { %2941 = vmatmul.msk.f32.vlgmr.msra.gmra.mxu2 %vm1383_vm6, %v1675_v57  ;;  %v3046_v57 = vor.u32 %v3276_v51, %v3043_v56  ;;  %v3018_v61 = vor.u32 %v3273_v59, %v3017_v58  ;;  %v2963_v51 = vld [vmem:[%s4686_s0 + $0x18] sm:$0xf0]  ;;  %v3302_v58 = vld [vmem:[%s4695_s18 + $0x78] sm:$0xff] }
 0x5ed   : > { %1997 = vmatpush.bf16.msrb.mxu2 %v3074_v28  ;;  %v3266_v28 = vld [vmem:[%s4686_s0 + $0x54] sm:$0xf0]  ;;  %v2966_v56 = vor.u32 %v3256_v54, %v2963_v51  ;;  %v3318_v59 = vld [vmem:[%s4695_s18 + $0xf8] sm:$0xff] }
 0x5f1   : > { %1998 = vmatpush.bf16.msrb.mxu2 %v3058_v43  ;;  %v3260_v43 = vld [vmem:[%s4686_s0 + $0x2c] sm:$0xf] }
 0x5f5   : > { %1999 = vmatpush.bf16.msrb.mxu2 %v3042_v55  ;;  %v2962_v55 = vor.u32 %v3258_v53, %v2961_v52 }
 0x65f   : > { %v1482_v63 = vpop.f32.mrf.mxu3  ;;  %v1604_v1 = vpop.f32.mrf.mxu2 }
 0x660   : > { %v1485_v0 = vpack.c.bf16 %v1482_v63, %v1482_v63  ;;  %v1607_v5 = vpack.c.bf16 %v1604_v1, %v1604_v1  ;;  %v3025_v63 = vld [vmem:[%s4686_s0 + $0x88] sm:$0xf]  ;;  %v3022_v1 = vor.u32 %v3271_v60, %v3019_v62 }
 0x662   : > { %2917 = vmatmul.msk.bf16.vlgmr.msra.gmra.mxu3 %vm1356_vm4, %v1485_v0  ;;  %v3274_v0 = vld [vmem:[%s4686_s0 + $0x94] sm:$0xf0]  ;;  %1987 = vmatpush.bf16.msrb.mxu1 %v3022_v1 }
 0x663   : > { %1971 = vmatpush.bf16.msra.mxu3 %v3066_v23  ;;  %v3265_v23 = vld [vmem:[%s4686_s0 + $0x4c] sm:$0xf0] }
 0x664   : > { %v2986_v25 = vor.u32 %v3265_v23, %v2985_v21  ;;  %v3299_v21 = vld [vmem:[%s4695_s18 + $0x60] sm:$0xff] }
 0x665   : > { %v3315_v23 = vld [vmem:[%s4695_s18 + $0xe0] sm:$0xff] }
 0x667   : > { %1972 = vmatpush.bf16.msra.mxu3 %v3050_v38  ;;  %v2971_v38 = vld [vmem:[%s4686_s0 + $0x30] sm:$0xf0] }
 0x668   : > { %v2974_v41 = vor.u32 %v3259_v36, %v2971_v38  ;;  %v3289_v36 = vld [vmem:[%s4695_s18 + $0x10] sm:$0xff]  ;;  %v3295_v38 = vld [vmem:[%s4695_s18 + $0x40] sm:$0xff] }
 0x66b   : > { %1973 = vmatpush.bf16.msra.mxu3 %v3034_v22  ;;  %v2954_v22 = vor.u32 %v3257_v47, %v2953_v45  ;;  %v3303_v45 = vld [vmem:[%s4695_s18 + $0x80] sm:$0xff] }
 0x66f   : > { %v1699_v2 = vpop.f32.mrf.mxu2  ;;  %1974 = vmatpush.bf16.msra.mxu3 %v3018_v61 }
 0x670   : > { %v1702_v4 = vpack.c.bf16 %v1699_v2, %v1699_v2  ;;  %v3026_v2 = vor.u32 %v3274_v0, %v3025_v63 }
 0x672   : > { %2950 = vmatmul.msk.bf16.vlgmr.msra.gmra.mxu0 %vm1356_vm4, %v1702_v4  ;;  %2938 = vmatmul.msk.bf16.vlgmr.msrb.gmra.mxu3 %vm1356_vm4, %v1607_v5  ;;  %v3272_v4 = vld [vmem:[%s4686_s0 + $0x8c] sm:$0xf]  ;;  %v3027_v5 = vld [vmem:[%s4686_s0 + $0x98] sm:$0xf0] }
 0x673   : > { %2000 = vmatpush.bf16.msrb.mxu2 %v3026_v2 }
 0x6e5   : > { %v1510_v6 = vpop.f32.mrf.mxu3 }
 0x6e6   : > { %v1539_v9 = vadd.f32 %v4932_v30, %v1510_v6  ;;  %v3075_v30 = vld [vmem:[%s4686_s0 + $0xf8] sm:$0xf0]  ;;  %v3030_v6 = vor.u32 %v3272_v4, %v3027_v5  ;;  %v3519_v5 = vld [vmem:[%s5255_s22] ss:$0 sm:$0xff] }
 0x6ed   : > { %v1512_v7 = vpop.f32.mrf.mxu3 }
 0x6ee   : > { %v3001_v7 = vld [vmem:[%s4686_s0 + $0x60] sm:$0xf] }
 0x6ef   : > { %v1727_v8 = vpop.f32.mrf.mxu0 }
 0x6f5   : > { %v1632_v10 = vpop.f32.mrf.mxu3 }
 0x6f6   : > { %v1636_v11 = vadd.f32 %v1632_v10, %v1539_v9  ;;  %v3267_v9 = vld [vmem:[%s4686_s0 + $0x64] sm:$0xf] }
 0x6f7   : > { %v1729_v13 = vpop.f32.mrf.mxu0 }
 0x6f8   : > { %v1731_v14 = vadd.f32 %v1727_v8, %v1636_v11  ;;  %v3269_v8 = vld [vmem:[%s4686_s0 + $0x6c] sm:$0xf0]  ;;  %v3003_v11 = vld [vmem:[%s4686_s0 + $0x70] sm:$0xf0]  ;;  %v3270_v13 = vld [vmem:[%s4686_s0 + $0x74] sm:$0xf0] }
 0x6f9   : > { %v3002_v10 = vor.u32 %v3269_v8, %v3001_v7  ;;  %v3520_v8 = vld [vmem:[%s5256_s28] ss:$0 sm:$0xff] }
 0x6fa   : > { %v1736_v15 = vadd.f32 %v3518_v12, %v1731_v14  ;;  %v3009_v12 = vld [vmem:[%s4686_s0 + $0x68] sm:$0xf]  ;;  %v3006_v14 = vor.u32 %v3267_v9, %v3003_v11 }
 0x6fb   : > { %1975 = vmatpush.bf16.msra.mxu3 %v3002_v10 }
 0x6fc   : > { %v4957_v16 = vadd.f32 %v1736_v15, %v4835_v3  ;;  %v3078_v3 = vor.u32 %v3284_v29, %v3075_v30  ;;  %v3010_v15 = vor.u32 %v3270_v13, %v3009_v12  ;;  %1988 = vmatpush.bf16.msrb.mxu1 %v3006_v14  ;;  %v2990_v29 = vor.u32 %v3263_v24, %v2987_v26  ;;  %v3301_v12 = vld [vmem:[%s4695_s18 + $0x70] sm:$0xff]  ;;  %v3310_v14 = vld [vmem:[%s4695_s18 + $0xb8] sm:$0xff]  ;;  %v3292_v24 = vld [vmem:[%s4695_s18 + $0x28] sm:$0xff] }
 0x6fd   : > { %v1634_v17 = vpop.f32.mrf.mxu3  ;;  %v2994_v30 = vor.u32 %v3266_v28, %v2993_v27  ;;  %v3317_v13 = vld [vmem:[%s4695_s18 + $0xf0] sm:$0xff]  ;;  %v3298_v26 = vld [vmem:[%s4695_s18 + $0x58] sm:$0xff]  ;;  %v3291_v28 = vld [vmem:[%s4695_s18 + $0x20] sm:$0xff] }
 0x6fe   : > { %1740 = vadd.xlane.f32.xlu0 %v4957_v16  ;;  %2010 = vmatpush.bf16.msrb.mxu0 %v3078_v3  ;;  %v3268_v17 = vld [vmem:[%s4686_s0 + $0x6c] sm:$0xf]  ;;  %v3314_v27 = vld [vmem:[%s4695_s18 + $0xd8] sm:$0xff] }
 0x6ff   : > { %v3014_v20 = vor.u32 %v3268_v17, %v3011_v18  ;;  %2001 = vmatpush.bf16.msrb.mxu2 %v3010_v15  ;;  %v3264_v3 = vld [vmem:[%s4686_s0 + $0x4c] sm:$0xf]  ;;  %1976 = vmatpush.bf16.msra.mxu3 %v2986_v25  ;;  %v3300_v15 = vld [vmem:[%s4695_s18 + $0x68] sm:$0xff]  ;;  %v3293_v18 = vld [vmem:[%s4695_s18 + $0x30] sm:$0xff] }
 0x700   : > { %1989 = vmatpush.bf16.msrb.mxu1 %v2990_v29  ;;  %v3316_v17 = vld [vmem:[%s4695_s18 + $0xe8] sm:$0xff]  ;;  %v3307_v29 = vld [vmem:[%s4695_s18 + $0xa0] sm:$0xff] }
 0x701   : > { %v3308_v25 = vld [vmem:[%s4695_s18 + $0xa8] sm:$0xff] }
 0x702   : > { %2011 = vmatpush.bf16.msrb.mxu0 %v3062_v46  ;;  %v2982_v46 = vor.u32 %v3260_v43, %v2979_v44  ;;  %v3287_v44 = vld [vmem:[%s4695_s18] sm:$0xff] }
 0x703   : > { %2002 = vmatpush.bf16.msrb.mxu2 %v2994_v30  ;;  %v3297_v30 = vld [vmem:[%s4695_s18 + $0x50] sm:$0xff] }
 0x704   : > { %1990 = vmatpush.bf16.msrb.mxu1 %v2974_v41  ;;  %v3304_v41 = vld [vmem:[%s4695_s18 + $0x88] sm:$0xff] }
 0x706   : > { %2012 = vmatpush.bf16.msrb.mxu0 %v3046_v57 }
 0x707   : > { %2003 = vmatpush.bf16.msrb.mxu2 %v2978_v42  ;;  %v1801_v42 = vld [vmem:[%s4689_s15] sm:$0xf]  ;;  %s5257_s15 = scalar_lea.vmem [#allocation21], %s4658_s10 }
 0x708   : > { %1991 = vmatpush.bf16.msrb.mxu1 %v2958_v50  ;;  %v1804_v43 = vperm.slane %v1801_v42, 1  ;;  %v1803_v52 = vperm.slane %v1801_v42, 0  ;;  %v1805_v54 = vperm.slane %v1801_v42, 2 }
 0x70a   : > { %2013 = vmatpush.bf16.msrb.mxu0 %v3030_v6 }
 0x70b   : > { %2004 = vmatpush.bf16.msrb.mxu2 %v2962_v55 }
 0x70c   : > { %2324 = vmatpush.bf16.msra.mxu1 %v3302_v58 }
 0x70e   : > { %2014 = vmatpush.bf16.msrb.mxu0 %v3014_v20  ;;  %v3309_v20 = vld [vmem:[%s4695_s18 + $0xb0] sm:$0xff] }
 0x70f   : > { %2337 = vmatpush.bf16.msra.mxu2 %v3310_v14 }
 0x710   : > { %2325 = vmatpush.bf16.msra.mxu1 %v3301_v12 }
 0x713   : > { %2338 = vmatpush.bf16.msra.mxu2 %v3309_v20 }
 0x714   : > { %2326 = vmatpush.bf16.msra.mxu1 %v3300_v15 }
 0x717   : > { %2339 = vmatpush.bf16.msra.mxu2 %v3308_v25 }
 0x718   : > { %2327 = vmatpush.bf16.msra.mxu1 %v3299_v21 }
 0x71b   : > { %2340 = vmatpush.bf16.msra.mxu2 %v3307_v29 }
 0x71c   : > { %2328 = vmatpush.bf16.msra.mxu1 %v3298_v26 }
 0x720   : > { %2329 = vmatpush.bf16.msra.mxu1 %v3297_v30 }
 0x771   : > { %v1741_v31 = vpop.xlane.xlu0 %1740 }
 0x772   : > { %v1742_v32 = vmul.f32 %v1741_v31, %v4844_v19  ;;  %v2995_v31 = vld [vmem:[%s4686_s0 + $0x58] sm:$0xf0] }
 0x774   : > { %v4970_v33 = vsub.f32 %v4957_v16, %v1742_v32  ;;  %v2998_v32 = vor.u32 %v3264_v3, %v2995_v31  ;;  %v3313_v3 = vld [vmem:[%s4695_s18 + $0xd0] sm:$0xff]  ;;  %v3290_v31 = vld [vmem:[%s4695_s18 + $0x18] sm:$0xff] }
 0x776   : > { %v1744_v34 = vmul.f32 %v4970_v33, %v4970_v33  ;;  %2015 = vmatpush.bf16.msrb.mxu0 %v2998_v32  ;;  %v3306_v32 = vld [vmem:[%s4695_s18 + $0x98] sm:$0xff] }
 0x777   : > { %2341 = vmatpush.bf16.msra.mxu2 %v3306_v32 }
 0x778   : > { %1745 = vadd.xlane.f32.xlu2 %v1744_v34  ;;  %v2969_v34 = vld [vmem:[%s4686_s0 + $0x20] sm:$0xf] }
 0x779   : > { %v2970_v37 = vor.u32 %v3261_v35, %v2969_v34  ;;  %v3296_v34 = vld [vmem:[%s4695_s18 + $0x48] sm:$0xff] }
 0x77a   : > { %2016 = vmatpush.bf16.msrb.mxu0 %v2982_v46  ;;  %v3312_v35 = vld [vmem:[%s4695_s18 + $0xc8] sm:$0xff]  ;;  %2330 = vmatpush.bf16.msra.mxu1 %v3296_v34  ;;  %v1806_v46 = vperm.slane %v1801_v42, 3 }
 0x77b   : > { %1977 = vmatpush.bf16.msra.mxu3 %v2970_v37  ;;  %v3305_v37 = vld [vmem:[%s4695_s18 + $0x90] sm:$0xff] }
 0x77c   : > { %2342 = vmatpush.bf16.msra.mxu2 %v3305_v37 }
 0x77e   : > { %2017 = vmatpush.bf16.msrb.mxu0 %v2966_v56  ;;  %2331 = vmatpush.bf16.msra.mxu1 %v3295_v38 }
 0x77f   : > { %1978 = vmatpush.bf16.msra.mxu3 %v2954_v22 }
 0x780   : > { %2343 = vmatpush.bf16.msra.mxu2 %v3304_v41 }
 0x782   : > { %2350 = vmatpush.bf16.msra.mxu0 %v3318_v59 }
 0x784   : > { %2344 = vmatpush.bf16.msra.mxu2 %v3303_v45 }
 0x786   : > { %2351 = vmatpush.bf16.msra.mxu0 %v3317_v13 }
 0x78a   : > { %2352 = vmatpush.bf16.msra.mxu0 %v3316_v17 }
 0x78e   : > { %2353 = vmatpush.bf16.msra.mxu0 %v3315_v23 }
 0x792   : > { %2354 = vmatpush.bf16.msra.mxu0 %v3314_v27 }
 0x796   : > { %2355 = vmatpush.bf16.msra.mxu0 %v3313_v3  ;;  %v3521_v3 = vld [vmem:[%s5257_s15] ss:$0 sm:$0xff] }
 0x79a   : > { %2356 = vmatpush.bf16.msra.mxu0 %v3312_v35 }
 0x79e   : > { %2357 = vmatpush.bf16.msra.mxu0 %v3311_v39 }
 0x7eb   : > { %v1746_v57 = vpop.xlane.xlu2 %1745 }
 0x7ec   : > { %v1747_v60 = vmul.f32 %v1746_v57, %v4844_v19 }
 0x7ee   : > { %v1748_v61 = vadd.f32 1e-05, %v1747_v60 }
 0x7f0   : > { %3542 = vrsqrt.f32 %v1748_v61  ;;  %vm1755_vm8 = vweird.f32 %v1748_v61 }
 0x7f6   : > { %v3543_v62 = vpop.eup %3542 }
 0x7f7   : > { %v1750_v63 = vmul.f32 %v3543_v62, %v1748_v61  ;;  %vm1756_vm7 = vweird.f32 %v3543_v62 }
 0x7f8   : > { %vm1757_vm9 = vmor %vm1755_vm8, %vm1756_vm7 }
 0x7f9   : > { %v1751_v0 = vmul.f32 %v3543_v62, %v1750_v63 }
 0x7fb   : > { %v1752_v1 = vmul.f32 0.5, %v1751_v0 }
 0x7fd   : > { %v1753_v2 = vsub.f32 1.5, %v1752_v1 }
 0x7ff   : > { %v1754_v4 = vmul.f32 %v3543_v62, %v1753_v2 }
 0x801   : > { %v1758_v6 = vsel %vm1757_vm9, %v3543_v62, %v1754_v4 }
 0x802   : > { %v1759_v7 = vmul.f32 %v1758_v6, %v4970_v33  ;;  %v3294_v33 = vld [vmem:[%s4695_s18 + $0x38] sm:$0xff]  ;;  %s5258_s18 = sld [smem:[#allocation67_spill]] }
 0x803   : > { %2311 = vmatpush.bf16.msrb.mxu3 %v3294_v33 }
 0x804   : > { %v1763_v9 = vmul.f32 %v3519_v5, %v1759_v7 }
 0x806   : > { %v1767_v10 = vadd.f32 %v3520_v8, %v1763_v9 }
 0x807   : > { %2312 = vmatpush.bf16.msrb.mxu3 %v3293_v18 }
 0x808   : > { %v1768_v11 = vpack.c.bf16 %v1767_v10, %v1767_v10  ;;  %p3207_p2 = scmp.ne.s32.totalorder %s5258_s18, 1 }
 0x80a   : > { %1979 = vmatmul.bf16.vlgmr.msra.gmra.mxu3 %v1768_v11  ;;  %1992 = vmatmul.bf16.vlgmr.msrb.gmra.mxu1 %v1768_v11 }
 0x80b   : > { %2005 = vmatmul.bf16.vlgmr.msrb.gmra.mxu2 %v1768_v11  ;;  %2018 = vmatmul.bf16.vlgmr.msrb.gmra.mxu0 %v1768_v11 }
 0x80c   : > { %2313 = vmatpush.bf16.msrb.mxu3 %v3292_v24 }
 0x810   : > { %2314 = vmatpush.bf16.msrb.mxu3 %v3291_v28 }
 0x814   : > { %2315 = vmatpush.bf16.msrb.mxu3 %v3290_v31 }
 0x818   : > { %2316 = vmatpush.bf16.msrb.mxu3 %v3289_v36 }
 0x81c   : > { %2317 = vmatpush.bf16.msrb.mxu3 %v3288_v40 }
 0x820   : > { %2318 = vmatpush.bf16.msrb.mxu3 %v3287_v44 }
 0x887   : > { %v1993_v47 = vpop.f32.mrf.mxu1 }
 0x888   : > { %v1994_v48 = vadd.f32 %v1993_v47, %v1804_v43  ;;  %v2019_v49 = vpop.f32.mrf.mxu0 }
 0x889   : > { %v2020_v22 = vadd.f32 %v2019_v49, %v1806_v46 }
 0x88a   : > { %v2024_v50 = vmul.f32 -1.702, %v1994_v48 }
 0x88b   : > { %v2026_v53 = vmul.f32 -1.702, %v2020_v22 }
 0x88c   : > { %v2029_v55 = vmul.f32 1.442695, %v2024_v50 }
 0x88d   : > { %v2033_v51 = vmul.f32 1.442695, %v2026_v53  ;;  %v1980_v56 = vpop.f32.mrf.mxu3 }
 0x88e   : > { %3544 = vpow2.f32 %v2029_v55  ;;  %v1981_v57 = vadd.f32 %v1980_v56, %v1803_v52  ;;  %v2006_v58 = vpop.f32.mrf.mxu2 }
 0x88f   : > { %3546 = vpow2.f32 %v2033_v51  ;;  %v2007_v59 = vadd.f32 %v2006_v58, %v1805_v54  ;;  %v1995_v60 = vpop.f32.mrf.mxu1 }
 0x890   : > { %v2023_v61 = vmul.f32 -1.702, %v1981_v57  ;;  %v2021_v62 = vpop.f32.mrf.mxu0 }
 0x891   : > { %v2025_v63 = vmul.f32 -1.702, %v2007_v59 }
 0x892   : > { %v2027_v0 = vmul.f32 1.442695, %v2023_v61 }
 0x893   : > { %v2031_v1 = vmul.f32 1.442695, %v2025_v63 }
 0x894   : > { %v3545_v2 = vpop.eup %3544  ;;  %3548 = vpow2.f32 %v2027_v0 }
 0x895   : > { %v3547_v4 = vpop.eup %3546  ;;  %v2036_v5 = vadd.f32 1.0, %v3545_v2  ;;  %3550 = vpow2.f32 %v2031_v1  ;;  %v1982_v6 = vpop.f32.mrf.mxu3 }
 0x896   : > { %v2038_v7 = vadd.f32 1.0, %v3547_v4  ;;  %v2008_v8 = vpop.f32.mrf.mxu2 }
 0x897   : > { %3552 = vrcp.f32 %v2036_v5 }
 0x898   : > { %3554 = vrcp.f32 %v2038_v7 }
 0x89a   : > { %v3549_v9 = vpop.eup %3548 }
 0x89b   : > { %v3551_v10 = vpop.eup %3550  ;;  %v2035_v11 = vadd.f32 1.0, %v3549_v9 }
 0x89c   : > { %v2037_v12 = vadd.f32 1.0, %v3551_v10 }
 0x89d   : > { %v3553_v13 = vpop.eup %3552  ;;  %3556 = vrcp.f32 %v2035_v11 }
 0x89e   : > { %v3555_v33 = vpop.eup %3554  ;;  %v2044_v14 = vmul.f32 %v3553_v13, %v1994_v48  ;;  %3558 = vrcp.f32 %v2037_v12 }
 0x89f   : > { %v2046_v15 = vmul.f32 %v3555_v33, %v2020_v22 }
 0x8a0   : > { %v2048_v17 = vpack.c.bf16 %v2044_v14, %v2044_v14 }
 0x8a1   : > { %v2050_v18 = vpack.c.bf16 %v2046_v15, %v2046_v15 }
 0x8a2   : > { %2332 = vmatmul.bf16.vlgmr.msra.gmra.mxu1 %v2048_v17 }
 0x8a3   : > { %v3557_v20 = vpop.eup %3556  ;;  %2358 = vmatmul.bf16.vlgmr.msra.gmra.mxu0 %v2050_v18 }
 0x8a4   : > { %v3559_v21 = vpop.eup %3558  ;;  %v2043_v23 = vmul.f32 %v3557_v20, %v1981_v57 }
 0x8a5   : > { %v2045_v24 = vmul.f32 %v3559_v21, %v2007_v59 }
 0x8a6   : > { %v2047_v25 = vpack.c.bf16 %v2043_v23, %v2043_v23 }
 0x8a7   : > { %v2049_v26 = vpack.c.bf16 %v2045_v24, %v2045_v24 }
 0x8a8   : > { %2319 = vmatmul.bf16.vlgmr.msrb.gmra.mxu3 %v2047_v25 }
 0x8a9   : > { %2345 = vmatmul.bf16.vlgmr.msra.gmra.mxu2 %v2049_v26 }
 0x91f   : > { %v2333_v27 = vpop.f32.mrf.mxu1 }
 0x920   : > { %v2359_v28 = vpop.f32.mrf.mxu0 }
 0x927   : > { %v2335_v29 = vpop.f32.mrf.mxu1 }
 0x928   : > { %v2361_v30 = vpop.f32.mrf.mxu0 }
 0x92b   : > { %v2320_v31 = vpop.f32.mrf.mxu3 }
 0x92c   : > { %v2321_v32 = vadd.f32 %v3521_v3, %v2320_v31  ;;  %v2346_v34 = vpop.f32.mrf.mxu2 }
 0x92e   : > { %v2334_v35 = vadd.f32 %v2333_v27, %v2321_v32 }
 0x930   : > { %v2347_v36 = vadd.f32 %v2346_v34, %v2334_v35 }
 0x932   : > { %v2360_v37 = vadd.f32 %v2359_v28, %v2347_v36  ;;  %2368 = sbr.rel (%p3207_p2) target bundleno = 2626 (0xa42), region = 168 }
 0x933   : > { %v2322_v38 = vpop.f32.mrf.mxu3 }
 0x934   : > { %v2363_v39 = vadd.f32 %v2360_v37, %v4957_v16  ;;  %v2348_v40 = vpop.f32.mrf.mxu2 }
 0x936   : > { %2364 = vst [vmem:[%s4732_s9] sm:$0xff] %v2363_v39 }
 0x937   : > { %2371 = vadd.xlane.f32.xlu0 %v2363_v39  ;;  %v3560_v53 = vld [vmem:[#allocation23] ss:$0 sm:$0xff]  ;;  %v3561_v51 = vld [vmem:[#allocation24] ss:$0 sm:$0xff] }
 0x9aa   : > { %v2372_v41 = vpop.xlane.xlu0 %2371 }
 0x9ab   : > { %v2373_v42 = vmul.f32 %v2372_v41, %v4844_v19 }
 0x9ad   : > { %v2374_v43 = vsub.f32 %v2363_v39, %v2373_v42 }
 0x9af   : > { %v2375_v44 = vmul.f32 %v2374_v43, %v2374_v43 }
 0x9b1   : > { %2376 = vadd.xlane.f32.xlu0 %v2375_v44 }
 0xa24   : > { %v2377_v45 = vpop.xlane.xlu0 %2376 }
 0xa25   : > { %v2378_v46 = vmul.f32 %v2377_v45, %v4844_v19 }
 0xa27   : > { %v2379_v47 = vadd.f32 1e-05, %v2378_v46 }
 0xa29   : > { %3562 = vrsqrt.f32 %v2379_v47  ;;  %vm2386_vm11 = vweird.f32 %v2379_v47 }
 0xa2f   : > { %v3563_v48 = vpop.eup %3562 }
 0xa30   : > { %v2381_v16 = vmul.f32 %v3563_v48, %v2379_v47  ;;  %vm2387_vm10 = vweird.f32 %v3563_v48 }
 0xa31   : > { %vm2388_vm12 = vmor %vm2386_vm11, %vm2387_vm10 }
 0xa32   : > { %v2382_v49 = vmul.f32 %v3563_v48, %v2381_v16 }
 0xa34   : > { %v2383_v22 = vmul.f32 0.5, %v2382_v49 }
 0xa36   : > { %v2384_v50 = vsub.f32 1.5, %v2383_v22 }
 0xa38   : > { %v2385_v52 = vmul.f32 %v3563_v48, %v2384_v50 }
 0xa3a   : > { %v2389_v54 = vsel %vm2388_vm12, %v3563_v48, %v2385_v52 }
 0xa3b   : > { %v2390_v55 = vmul.f32 %v2389_v54, %v2374_v43 }
 0xa3d   : > { %v2394_v56 = vmul.f32 %v3560_v53, %v2390_v55 }
 0xa3f   : > { %v2398_v57 = vadd.f32 %v3561_v51, %v2394_v56 }
 0xa41   : > { %2399 = vst [vmem:[%s4732_s9] sm:$0xff] %v2398_v57 }
 0xa42 PF: > { %s5259_s10 = sld [smem:[#allocation68_spill]]  ;;  %s2413_s7 = sshll.u32 %s4732_s9, 4  ;;  %s2414_s7 = int_to_ptr.vmem [resolvable:$true] %s2413_s7 }
 0xa43   : > { %s5260_s26 = sld [smem:[#allocation64_spill]] }
 0xa44   : > { %s5262_s13 = sld [smem:[#allocation96_spill]] }
 0xa48   : > { %s3209_s21 = sshll.u32 %s5259_s10, 3 }
 0xa49   : > { %s5263_s23 = sand.u32 1, %s5260_s26  }
 0xa4a   : > { %s2411_s1 = scalar_lea.hbm %s5262_s13, %s3209_s21  ;;  %s2401_s6 = scalar_lea.sflag [#allocation8], %s5263_s23 }
 0xa4b   : > { %s2415_s16 = sshll.u32 %s2411_s1, 4  ;;  %s4148_s19 = scalar_lea.hbm %s5262_s13, 16  ;;  %s2416_s16 = int_to_ptr.hbm [resolvable:$true] %s2415_s16 }
 0xa4c   : > { %s4142_s8 = sshra.s32 %s2416_s16, 4  ;;  %s4143_s8 = int_to_ptr.hbm [resolvable:$true] %s4142_s8 }
 0xa4d   : > { %s4144_s24 = scalar_lea.hbm %s4143_s8, 8  ;;  %p4149_p10 = scmp.lt.s32.totalorder %s4143_s8, %s5262_s13 }
 0xa4e   : > { %p4145_p5 = scmp.ne.s32.totalorder %s4143_s8, %s4144_s24  ;;  %p4150_p11 = scmp.lt.s32.totalorder %s4148_s19, %s4144_s24 }
 0xa50   : > { %p4146_p6 = pnand %p4145_p5, %p4508_p12  ;;  %p4151_p3 = por %p4150_p11, %p4149_p10 }
 0xa52   : > { %p4147_p9 = pneg %p4146_p6 }
 0xa54   : > { %p4152_p7 = pnand %p4151_p3, %p4147_p9 }
 0xa56   : > { %4155 = shalt.err (!%p4152_p7)
}
 0xa57   : > { %3353 = dma.vmem_to_hbm [thread:$0]  (%p4508_p12), %s2414_s7, 128, %s2416_s16, %s2401_s6  }
 0xa58 PF: > { %s5264_s9 = sld [smem:[#allocation70_spill]] }
 0xa59   : > { %s5265_s2 = sld [smem:[#allocation63_spill]] }
 0xa5e   : > { %p3404_p8 = scmp.ge.s32.totalorder %s5264_s9, 2 }
 0xa5f   : > { %s2427_s12 = sand.u32 1, %s5265_s2  }
 0xa60   : > { %p3394_p13 = pnand %p3404_p8, %p4516_p4  ;;  %s2428_s3 = scalar_lea.sflag [#allocation8], %s2427_s12 }
 0xa62   : > { %p3395_p0 = pneg %p3394_p13 }
 0xa64   : > { %4251 = dma.done.wait (%p3395_p0), %s2428_s3, 128  }
 0xa65   : > { %4253 = vsyncadd (%p3395_p0), %s2428_s3, 4294967168  ;;  %s55_s22 = sadd.s32 1, %s5264_s9   ;;  %s5267_s28 = sld [smem:[#allocation64_spill]] }
 0xa66   : > { %p52_p1 = scmp.ge.s32.totalorder %s55_s22, 6   ;;  %s5268_s2 = sld [smem:[#allocation65_spill]] }
 0xa67   : > { %s5269_s29 = sld [smem:[#allocation75_spill]]  ;;  %s5275_s0 = smov %s4272_s30 }
 0xa68   : > { %s5270_s15 = sld [smem:[#allocation66_spill]]  ;;  %s5277_s19 = smov %s4288_s20 }
 0xa69   : > { %s5271_s18 = sld [smem:[#allocation73_spill]] }
 0xa6a   : > { %s5272_s1 = sld [smem:[#allocation69_spill]] }
 0xa6b   : > { %s5273_s10 = sld [smem:[#allocation71_spill]] }
 0xa6c   : > { %s5274_s21 = sld [smem:[#allocation72_spill]] }
 0xa6d   :  { %54 = sbr.rel (!%p52_p1) target bundleno = 49 (0x31), region = 312 }
 0xa6e   : > { %s5276_s30 = smov %s5270_s15 }
 0xa71   : > { %s5278_s20 = smov %s5273_s10 }
 0xa72   :  { %2434 = vsyncpa [#allocation7], 1 }
 0xa73   :  { %2436 = vsyncpa [#allocation7 + $0x1], 1 }
 0xa74   :  { %2437 = vsyncpa [#allocation10], 1 }
 0xa75   :  { %2439 = vsyncpa [#allocation10 + $0x1], 1 }
 0xa76   :  { %2440 = vsyncpa [#allocation13], 1 }
 0xa77   :  { %2442 = vsyncpa [#allocation13 + $0x1], 1 }
 0xa78   :  { %2443 = vsyncpa [#allocation16], 1 }
 0xa79   :  { %2445 = vsyncpa [#allocation16 + $0x1], 1 }
 0xa7a   :  { %2446 = vsyncpa [#allocation19], 1 }
 0xa7b   :  { %2448 = vsyncpa [#allocation19 + $0x1], 1 }
 0xa7c   :  { %2449 = vsyncpa [#allocation22], 1 }
 0xa7d   :  { %2451 = vsyncpa [#allocation22 + $0x1], 1 }
 0xa7e   :  { %2452 = vsyncpa [#allocation25], 1 }
 0xa7f   :  { %2453 = vsyncpa [#allocation8], 1 }
 0xa80   :  { %2455 = vsyncpa [#allocation8 + $0x1], 1 }
 0xa81   :  { %2456 = vsyncmov [#allocation3] }
 0xa84   :  { %s2457_s26 = vpop.sfrf %2456 }
 0xa85   :  { %p3212_p12 = scmp.ne.s32.totalorder %s2457_s26, 0 }
 0xa87   :  { %2461 = shalt.err (%p3212_p12)  }
 0xa88   :  { %2463 = vsyncmov [#allocation3 + $0x1] }
 0xa8b   :  { %s2464_s30 = vpop.sfrf %2463 }
 0xa8c   :  { %p3213_p4 = scmp.ne.s32.totalorder %s2464_s30, 0 }
 0xa8e   :  { %2468 = shalt.err (%p3213_p4)  }
 0xa8f   :  { %2470 = vsyncmov [#allocation3 + $0x2] }
 0xa92   :  { %s2471_s20 = vpop.sfrf %2470 }
 0xa93   :  { %p3214_p2 = scmp.ne.s32.totalorder %s2471_s20, 0 }
 0xa95   :  { %2475 = shalt.err (%p3214_p2)  }
 0xa96   :  { %2477 = vsyncmov [#allocation3 + $0x3] }
 0xa99   :  { %s2478_s4 = vpop.sfrf %2477 }
 0xa9a   :  { %p3215_p5 = scmp.ne.s32.totalorder %s2478_s4, 0 }
 0xa9c   :  { %2482 = shalt.err (%p3215_p5)  }
 0xa9d   :  { %2484 = vsyncmov [#allocation3 + $0x4] }
 0xaa0   :  { %s2485_s22 = vpop.sfrf %2484 }
 0xaa1   :  { %p3216_p6 = scmp.ne.s32.totalorder %s2485_s22, 0 }
 0xaa3   :  { %2489 = shalt.err (%p3216_p6)  }
 0xaa4   :  { %2491 = vsyncmov [#allocation3 + $0x5] }
 0xaa7   :  { %s2492_s28 = vpop.sfrf %2491 }
 0xaa8   :  { %p3217_p9 = scmp.ne.s32.totalorder %s2492_s28, 0 }
 0xaaa   :  { %2496 = shalt.err (%p3217_p9)  }
 0xaab   :  { %2498 = vsyncmov [#allocation3 + $0x6] }
 0xaae   :  { %s2499_s18 = vpop.sfrf %2498 }
 0xaaf   :  { %p3218_p10 = scmp.ne.s32.totalorder %s2499_s18, 0 }
 0xab1   :  { %2503 = shalt.err (%p3218_p10)  }
 0xab2   :  { %2505 = vsyncmov [#allocation3 + $0x7] }
 0xab5   :  { %s2506_s29 = vpop.sfrf %2505 }
 0xab6   :  { %p3219_p11 = scmp.ne.s32.totalorder %s2506_s29, 0 }
 0xab8   :  { %2510 = shalt.err (%p3219_p11)  }

</bundles_post_ra>
